<compile_context>
chip_gen: v7x
topology: tpu7x:2x2x1
jax: 0.10.0
libtpu: 0.0.40
codegen_flags: <defaults>
</compile_context>

<pallas_src>
import functools
import math

import jax
import jax.numpy as jnp
import numpy as np
from jax import lax
from jax.experimental import pallas as pl
from jax.experimental.pallas import tpu as pltpu


def _band_matrix(n: int, half: int) -> np.ndarray:
    """[n, n] ones where |i - j| <= half (zero-padded 1-D box sum)."""
    idx = np.arange(n)
    return (np.abs(idx[:, None] - idx[None, :]) <= half).astype(np.float32)


def _vmem_budget_bytes() -> int:
    """Per-generation VMEM budget (~96 MiB on v5e/v6e, ~48 MiB on v7x)."""
    try:
        cap = int(pltpu.get_tpu_info().vmem_capacity_bytes)
    except Exception:  # conservative fallback (fits every generation)
        cap = 64 * 1024 * 1024
    return (cap * 3) // 4


def _estimate_step_vmem(tb: int, H: int, W: int) -> int:
    """Rough per-grid-step VMEM bytes for a batch tile of `tb` images."""
    s = tb * W
    n5 = 5 * s
    return 4 * (2 * 2 * H * s      # double-buffered I, J input tiles
                + 2 * H * H        # double-buffered SH band constant
                + 2 * 2 * n5       # image-id row (+ rolled copy), buffered
                + 3 * H * n5       # X, T, Y
                + 2 * H * n5       # roll / select temporaries
                + 12 * H * s)      # epilogue elementwise temporaries


def _pick_batch_tile(b_pad: int, H: int, W: int, vmem_budget: int) -> int:
    """Largest lane-legal batch tile fitting VMEM; prefer >= 2 grid steps."""
    legal = [tb for tb in range(1, b_pad + 1)
             if b_pad % tb == 0 and (tb == b_pad or (tb * W) % 128 == 0)]
    fitting = [tb for tb in legal
               if _estimate_step_vmem(tb, H, W) <= vmem_budget]
    if not fitting:
        # TODO(synk): row-tile H (second grid axis with a +/-half halo) instead
        # of overshooting the VMEM budget for very large images.
        return min(legal)
    # Prefer >= 2 grid steps: enables v7x megacore on the "parallel" batch
    # axis and DMA/compute overlap on single-core chips (per-step overhead
    # is negligible).
    multi = [tb for tb in fitting if b_pad // tb >= 2]
    return max(multi) if multi else max(fitting)


def _ncc_kernel(i_ref, j_ref, sh_ref, img_ref, out_ref, *, S: int, half: int,
                win_size: float):
    I = i_ref[...]            # [H, S]   S = TB * W (TB lane-stacked images)
    J = j_ref[...]
    SH = sh_ref[...]          # [H, H]   banded ones (row-side box sum)
    img = img_ref[...]        # [1, 5S]  image id per lane (f32, exact ints)

    # Fuse the five box-sum operands into one lane-stacked [H, 5S] slab.
    X = jnp.concatenate([I, J, I * I, J * J, I * J], axis=1)          # [H, 5S]

    # Row-side zero-padded box sum: one MXU matmul with the banded ones
    # matrix.  HIGHEST precision keeps the sums exact f32 (the E[x^2]-mu^2
    # cancellation in the variance terms is sensitive to it).
    # TODO(synk): for H >> 128, switch the row side to a sublane shift-add
    # filter and add an H grid axis so X/T/Y are not fully VMEM-resident.
    T = jnp.dot(SH, X, preferred_element_type=jnp.float32,
                precision=lax.Precision.HIGHEST)                      # [H, 5S]

    # Column-side zero-padded box sum: separable shift-add.  2*half lane
    # rotations (XLU) + masked adds (VPU) replace the old [5S,5S]
    # block-diagonal matmul.  The image-id row is rolled with the same shift
    # as the data, so "source lane is in the same image" is computed exactly,
    # independent of the rotate direction convention.
    n_lanes = 5 * S
    Y = T
    for s in range(1, half + 1):
        for sh in (s, n_lanes - s):          # +s and -s lane rotations
            src_img = pltpu.roll(img, shift=sh, axis=1)               # [1, 5S]
            valid = src_img == img
            Y = Y + jnp.where(valid, pltpu.roll(T, shift=sh, axis=1), 0.0)

    I_sum = Y[:, 0 * S:1 * S]
    J_sum = Y[:, 1 * S:2 * S]
    I2_sum = Y[:, 2 * S:3 * S]
    J2_sum = Y[:, 3 * S:4 * S]
    IJ_sum = Y[:, 4 * S:5 * S]

    inv_win = 1.0 / win_size
    u_I = I_sum * inv_win
    u_J = J_sum * inv_win

    cross = IJ_sum - u_J * I_sum - u_I * J_sum + u_I * u_J * win_size
    I_var = I2_sum - 2.0 * u_I * I_sum + u_I * u_I * win_size
    J_var = J2_sum - 2.0 * u_J * J_sum + u_J * u_J * win_size

    cc = cross * cross * pl.reciprocal(I_var * J_var + 1e-5, approx=False)

    # One lane-dense (1, 128) partial per grid step: unmasked store, no
    # resident accumulator, so the batch grid axis stays "parallel".
    out_ref[...] = jnp.zeros((1, 128), jnp.float32) + jnp.sum(cc)


def ncc_loss(y_true: jnp.ndarray, y_pred: jnp.ndarray, win=None) -> jnp.ndarray:
    """Pallas forward pass of the NCC loss (2D case, NCHW inputs)."""
    assert y_true.ndim == 4, "Pallas NCC kernel implements the 2D (NCHW) case"
    B, C, H, W = y_true.shape
    assert C == 1, "sum filter has a single input channel"
    win = [9, 9] if win is None else list(win)
    assert len(win) == 2 and win[0] == win[1] and win[0] % 2 == 1, (
        "kernel (like the PyTorch padding rule) assumes a square, odd window")
    half = win[0] // 2
    win_size = float(np.prod(win))

    # Lane-dense packing: pad the batch so each grid step's slab is a
    # multiple of 128 lanes (zero-padded images contribute exactly 0).
    align = 128 // math.gcd(W, 128)
    if align > 8:
        # TODO(synk): zero-pad W to a lane-friendly width and mask the pad
        # columns out of the cc sum instead of falling back to one big slab.
        align = 1
    B_pad = ((B + align - 1) // align) * align

    def to_lane_stacked(x):
        x = x.reshape(B, H, W).astype(jnp.float32)
        if B_pad != B:
            x = jnp.concatenate(
                [x, jnp.zeros((B_pad - B, H, W), jnp.float32)], axis=0)
        # [B_pad, H, W] -> [H, B_pad*W]  (wrapper-side layout plumbing)
        return jnp.transpose(x, (1, 0, 2)).reshape(H, B_pad * W)

    I = to_lane_stacked(y_true)
    J = to_lane_stacked(y_pred)

    budget = _vmem_budget_bytes()
    TB = _pick_batch_tile(B_pad, H, W, budget)
    G = B_pad // TB
    S = TB * W

    SH = jnp.asarray(_band_matrix(H, half))                          # [H, H]
    # Image id per lane of the fused [H, 5S] operand (5 quantities x TB
    # images, W lanes each).  f32 so the in-kernel compare is a plain VPU op.
    img_id = jnp.asarray(
        np.repeat(np.arange(5 * TB, dtype=np.float32), W).reshape(1, 5 * S))

    kernel = functools.partial(_ncc_kernel, S=S, half=half, win_size=win_size)

    partials = pl.pallas_call(
        kernel,
        out_shape=jax.ShapeDtypeStruct((1, G * 128), jnp.float32),
        grid_spec=pltpu.PrefetchScalarGridSpec(
            num_scalar_prefetch=0,
            grid=(G,),
            in_specs=[
                pl.BlockSpec((H, S), lambda g: (0, g)),
                pl.BlockSpec((H, S), lambda g: (0, g)),
                pl.BlockSpec((H, H), lambda g: (0, 0)),
                pl.BlockSpec((1, 5 * S), lambda g: (0, 0)),
            ],
            out_specs=pl.BlockSpec((1, 128), lambda g: (0, g)),
        ),
        compiler_params=pltpu.CompilerParams(
            dimension_semantics=("parallel",),
            vmem_limit_bytes=budget,
        ),
    )(I, J, SH, img_id)

    cc_sum = jnp.sum(partials.reshape(G, 128)[:, 0])
    # conv is "same": cc has B*C*H*W elements; zero-padded batch images
    # contribute exactly 0 (cross == 0), so padding never changes the loss.
    return -cc_sum / (B * C * H * W)


def _ncc_reference(y_true, y_pred, win=None):
    """Plain-JAX reference using lax.conv (mirrors the PyTorch module)."""
    B, C, H, W = y_true.shape
    win = [9, 9] if win is None else win
    pad = math.floor(win[0] / 2)
    win_size = float(np.prod(win))
    filt = jnp.ones((1, 1, *win), jnp.float32)

    def conv(x):
        return lax.conv_general_dilated(
            x.astype(jnp.float32), filt, window_strides=(1, 1),
            padding=[(pad, pad), (pad, pad)],
            dimension_numbers=("NCHW", "OIHW", "NCHW"),
            precision=lax.Precision.HIGHEST)

    Ii = y_true.astype(jnp.float32)
    Ji = y_pred.astype(jnp.float32)
    I_sum, J_sum = conv(Ii), conv(Ji)
    I2_sum, J2_sum, IJ_sum = conv(Ii * Ii), conv(Ji * Ji), conv(Ii * Ji)
    u_I, u_J = I_sum / win_size, J_sum / win_size
    cross = IJ_sum - u_J * I_sum - u_I * J_sum + u_I * u_J * win_size
    I_var = I2_sum - 2 * u_I * I_sum + u_I * u_I * win_size
    J_var = J2_sum - 2 * u_J * J_sum + u_J * u_J * win_size
    cc = cross * cross / (I_var * J_var + 1e-5)
    return -jnp.mean(cc)


if __name__ == "__main__":
    key = jax.random.PRNGKey(0)
    k1, k2 = jax.random.split(key)
    B, C, H, W = 2, 1, 16, 16
    y_true = jax.random.uniform(k1, (B, C, H, W), dtype=jnp.float32)
    y_pred = jax.random.uniform(k2, (B, C, H, W), dtype=jnp.float32)

    loss = jax.block_until_ready(ncc_loss(y_true, y_pred))
    ref = jax.block_until_ready(_ncc_reference(y_true, y_pred))
    np.testing.assert_allclose(np.asarray(loss), np.asarray(ref),
                               rtol=1e-4, atol=1e-5)
    print("KERNEL_OK")
</pallas_src>

<mosaic_0001>
module attributes {stable_mosaic.version = 11 : i64} {
  func.func @_ncc_kernel(%arg0: i32, %arg1: memref<16x128xf32, #tpu.memory_space<vmem>>, %arg2: memref<16x128xf32, #tpu.memory_space<vmem>>, %arg3: memref<16x16xf32, #tpu.memory_space<vmem>>, %arg4: memref<1x640xf32, #tpu.memory_space<vmem>>, %arg5: memref<1x128xf32, #tpu.memory_space<vmem>>) attributes {dimension_semantics = [#tpu.dimension_semantics<parallel>], iteration_bounds = array<i64: 1>, scalar_prefetch = 0 : i64, scratch_operands = 0 : i64, tpu.core_type = #tpu.core_type<tc>, window_params = [{transform_indices = @transform_0, window_bounds = array<i64: 16, 128>}, {transform_indices = @transform_1, window_bounds = array<i64: 16, 128>}, {pipeline_mode = #tpu.pipeline_mode<synchronous>, transform_indices = @transform_2, window_bounds = array<i64: 16, 16>}, {pipeline_mode = #tpu.pipeline_mode<synchronous>, transform_indices = @transform_3, window_bounds = array<i64: 1, 640>}, {transform_indices = @transform_4, window_bounds = array<i64: 1, 128>}]} {
    %c0 = arith.constant 0 : index
    %c0_0 = arith.constant 0 : index
    %0 = vector.load %arg1[%c0, %c0_0] : memref<16x128xf32, #tpu.memory_space<vmem>>, vector<16x128xf32>
    %c0_1 = arith.constant 0 : index
    %c0_2 = arith.constant 0 : index
    %1 = vector.load %arg2[%c0_1, %c0_2] : memref<16x128xf32, #tpu.memory_space<vmem>>, vector<16x128xf32>
    %c0_3 = arith.constant 0 : index
    %c0_4 = arith.constant 0 : index
    %2 = vector.load %arg3[%c0_3, %c0_4] : memref<16x16xf32, #tpu.memory_space<vmem>>, vector<16x16xf32>
    %c0_5 = arith.constant 0 : index
    %c0_6 = arith.constant 0 : index
    %3 = vector.load %arg4[%c0_5, %c0_6] : memref<1x640xf32, #tpu.memory_space<vmem>>, vector<1x640xf32>
    %4 = arith.mulf %0, %0 : vector<16x128xf32>
    %5 = arith.mulf %1, %1 : vector<16x128xf32>
    %6 = arith.mulf %0, %1 : vector<16x128xf32>
    %7 = tpu.concatenate %0, %1, %4, %5, %6 in 1 : vector<16x128xf32>, vector<16x128xf32>, vector<16x128xf32>, vector<16x128xf32>, vector<16x128xf32> -> vector<16x640xf32>
    %cst = arith.constant dense<0.000000e+00> : vector<16x640xf32>
    %8 = tpu.matmul %2, %7, %cst {dimension_numbers = #tpu.dot_dimension_numbers<[1], [0], [0], [1], [0, 0, 1, 1], [], []>, precision = #tpu.contract_precision<fp32>} : vector<16x16xf32>, vector<16x640xf32>, vector<16x640xf32> -> vector<16x640xf32>
    %c1_i32 = arith.constant 1 : i32
    %9 = tpu.dynamic_rotate %3 by %c1_i32 dim 1 : vector<1x640xf32>, i32 -> vector<1x640xf32>
    %10 = arith.cmpf oeq, %9, %3 : vector<1x640xf32>
    %c1_i32_7 = arith.constant 1 : i32
    %11 = tpu.dynamic_rotate %8 by %c1_i32_7 dim 1 : vector<16x640xf32>, i32 -> vector<16x640xf32>
    %cst_8 = arith.constant 0.000000e+00 : f32
    %12 = vector.shape_cast %10 : vector<1x640xi1> to vector<1x640xi1>
    %13 = vector.broadcast %12 : vector<1x640xi1> to vector<16x640xi1>
    %14 = vector.broadcast %cst_8 : f32 to vector<16x640xf32>
    %15 = arith.select %13, %11, %14 : vector<16x640xi1>, vector<16x640xf32>
    %16 = arith.addf %8, %15 : vector<16x640xf32>
    %c639_i32 = arith.constant 639 : i32
    %17 = tpu.dynamic_rotate %3 by %c639_i32 dim 1 : vector<1x640xf32>, i32 -> vector<1x640xf32>
    %18 = arith.cmpf oeq, %17, %3 : vector<1x640xf32>
    %c639_i32_9 = arith.constant 639 : i32
    %19 = tpu.dynamic_rotate %8 by %c639_i32_9 dim 1 : vector<16x640xf32>, i32 -> vector<16x640xf32>
    %cst_10 = arith.constant 0.000000e+00 : f32
    %20 = vector.shape_cast %18 : vector<1x640xi1> to vector<1x640xi1>
    %21 = vector.broadcast %20 : vector<1x640xi1> to vector<16x640xi1>
    %22 = vector.broadcast %cst_10 : f32 to vector<16x640xf32>
    %23 = arith.select %21, %19, %22 : vector<16x640xi1>, vector<16x640xf32>
    %24 = arith.addf %16, %23 : vector<16x640xf32>
    %c2_i32 = arith.constant 2 : i32
    %25 = tpu.dynamic_rotate %3 by %c2_i32 dim 1 : vector<1x640xf32>, i32 -> vector<1x640xf32>
    %26 = arith.cmpf oeq, %25, %3 : vector<1x640xf32>
    %c2_i32_11 = arith.constant 2 : i32
    %27 = tpu.dynamic_rotate %8 by %c2_i32_11 dim 1 : vector<16x640xf32>, i32 -> vector<16x640xf32>
    %cst_12 = arith.constant 0.000000e+00 : f32
    %28 = vector.shape_cast %26 : vector<1x640xi1> to vector<1x640xi1>
    %29 = vector.broadcast %28 : vector<1x640xi1> to vector<16x640xi1>
    %30 = vector.broadcast %cst_12 : f32 to vector<16x640xf32>
    %31 = arith.select %29, %27, %30 : vector<16x640xi1>, vector<16x640xf32>
    %32 = arith.addf %24, %31 : vector<16x640xf32>
    %c638_i32 = arith.constant 638 : i32
    %33 = tpu.dynamic_rotate %3 by %c638_i32 dim 1 : vector<1x640xf32>, i32 -> vector<1x640xf32>
    %34 = arith.cmpf oeq, %33, %3 : vector<1x640xf32>
    %c638_i32_13 = arith.constant 638 : i32
    %35 = tpu.dynamic_rotate %8 by %c638_i32_13 dim 1 : vector<16x640xf32>, i32 -> vector<16x640xf32>
    %cst_14 = arith.constant 0.000000e+00 : f32
    %36 = vector.shape_cast %34 : vector<1x640xi1> to vector<1x640xi1>
    %37 = vector.broadcast %36 : vector<1x640xi1> to vector<16x640xi1>
    %38 = vector.broadcast %cst_14 : f32 to vector<16x640xf32>
    %39 = arith.select %37, %35, %38 : vector<16x640xi1>, vector<16x640xf32>
    %40 = arith.addf %32, %39 : vector<16x640xf32>
    %c3_i32 = arith.constant 3 : i32
    %41 = tpu.dynamic_rotate %3 by %c3_i32 dim 1 : vector<1x640xf32>, i32 -> vector<1x640xf32>
    %42 = arith.cmpf oeq, %41, %3 : vector<1x640xf32>
    %c3_i32_15 = arith.constant 3 : i32
    %43 = tpu.dynamic_rotate %8 by %c3_i32_15 dim 1 : vector<16x640xf32>, i32 -> vector<16x640xf32>
    %cst_16 = arith.constant 0.000000e+00 : f32
    %44 = vector.shape_cast %42 : vector<1x640xi1> to vector<1x640xi1>
    %45 = vector.broadcast %44 : vector<1x640xi1> to vector<16x640xi1>
    %46 = vector.broadcast %cst_16 : f32 to vector<16x640xf32>
    %47 = arith.select %45, %43, %46 : vector<16x640xi1>, vector<16x640xf32>
    %48 = arith.addf %40, %47 : vector<16x640xf32>
    %c637_i32 = arith.constant 637 : i32
    %49 = tpu.dynamic_rotate %3 by %c637_i32 dim 1 : vector<1x640xf32>, i32 -> vector<1x640xf32>
    %50 = arith.cmpf oeq, %49, %3 : vector<1x640xf32>
    %c637_i32_17 = arith.constant 637 : i32
    %51 = tpu.dynamic_rotate %8 by %c637_i32_17 dim 1 : vector<16x640xf32>, i32 -> vector<16x640xf32>
    %cst_18 = arith.constant 0.000000e+00 : f32
    %52 = vector.shape_cast %50 : vector<1x640xi1> to vector<1x640xi1>
    %53 = vector.broadcast %52 : vector<1x640xi1> to vector<16x640xi1>
    %54 = vector.broadcast %cst_18 : f32 to vector<16x640xf32>
    %55 = arith.select %53, %51, %54 : vector<16x640xi1>, vector<16x640xf32>
    %56 = arith.addf %48, %55 : vector<16x640xf32>
    %c4_i32 = arith.constant 4 : i32
    %57 = tpu.dynamic_rotate %3 by %c4_i32 dim 1 : vector<1x640xf32>, i32 -> vector<1x640xf32>
    %58 = arith.cmpf oeq, %57, %3 : vector<1x640xf32>
    %c4_i32_19 = arith.constant 4 : i32
    %59 = tpu.dynamic_rotate %8 by %c4_i32_19 dim 1 : vector<16x640xf32>, i32 -> vector<16x640xf32>
    %cst_20 = arith.constant 0.000000e+00 : f32
    %60 = vector.shape_cast %58 : vector<1x640xi1> to vector<1x640xi1>
    %61 = vector.broadcast %60 : vector<1x640xi1> to vector<16x640xi1>
    %62 = vector.broadcast %cst_20 : f32 to vector<16x640xf32>
    %63 = arith.select %61, %59, %62 : vector<16x640xi1>, vector<16x640xf32>
    %64 = arith.addf %56, %63 : vector<16x640xf32>
    %c636_i32 = arith.constant 636 : i32
    %65 = tpu.dynamic_rotate %3 by %c636_i32 dim 1 : vector<1x640xf32>, i32 -> vector<1x640xf32>
    %66 = arith.cmpf oeq, %65, %3 : vector<1x640xf32>
    %c636_i32_21 = arith.constant 636 : i32
    %67 = tpu.dynamic_rotate %8 by %c636_i32_21 dim 1 : vector<16x640xf32>, i32 -> vector<16x640xf32>
    %cst_22 = arith.constant 0.000000e+00 : f32
    %68 = vector.shape_cast %66 : vector<1x640xi1> to vector<1x640xi1>
    %69 = vector.broadcast %68 : vector<1x640xi1> to vector<16x640xi1>
    %70 = vector.broadcast %cst_22 : f32 to vector<16x640xf32>
    %71 = arith.select %69, %67, %70 : vector<16x640xi1>, vector<16x640xf32>
    %72 = arith.addf %64, %71 : vector<16x640xf32>
    %73 = vector.extract_strided_slice %72 {offsets = [0, 0], sizes = [16, 128], strides = [1, 1]} : vector<16x640xf32> to vector<16x128xf32>
    %74 = vector.extract_strided_slice %72 {offsets = [0, 128], sizes = [16, 128], strides = [1, 1]} : vector<16x640xf32> to vector<16x128xf32>
    %75 = vector.extract_strided_slice %72 {offsets = [0, 256], sizes = [16, 128], strides = [1, 1]} : vector<16x640xf32> to vector<16x128xf32>
    %76 = vector.extract_strided_slice %72 {offsets = [0, 384], sizes = [16, 128], strides = [1, 1]} : vector<16x640xf32> to vector<16x128xf32>
    %77 = vector.extract_strided_slice %72 {offsets = [0, 512], sizes = [16, 128], strides = [1, 1]} : vector<16x640xf32> to vector<16x128xf32>
    %cst_23 = arith.constant 0.0123456791 : f32
    %78 = vector.broadcast %cst_23 : f32 to vector<16x128xf32>
    %79 = arith.mulf %73, %78 : vector<16x128xf32>
    %cst_24 = arith.constant 0.0123456791 : f32
    %80 = vector.broadcast %cst_24 : f32 to vector<16x128xf32>
    %81 = arith.mulf %74, %80 : vector<16x128xf32>
    %82 = arith.mulf %81, %73 : vector<16x128xf32>
    %83 = arith.subf %77, %82 : vector<16x128xf32>
    %84 = arith.mulf %79, %74 : vector<16x128xf32>
    %85 = arith.subf %83, %84 : vector<16x128xf32>
    %86 = arith.mulf %79, %81 : vector<16x128xf32>
    %cst_25 = arith.constant 8.100000e+01 : f32
    %87 = vector.broadcast %cst_25 : f32 to vector<16x128xf32>
    %88 = arith.mulf %86, %87 : vector<16x128xf32>
    %89 = arith.addf %85, %88 : vector<16x128xf32>
    %cst_26 = arith.constant 2.000000e+00 : f32
    %90 = vector.broadcast %cst_26 : f32 to vector<16x128xf32>
    %91 = arith.mulf %90, %79 : vector<16x128xf32>
    %92 = arith.mulf %91, %73 : vector<16x128xf32>
    %93 = arith.subf %75, %92 : vector<16x128xf32>
    %94 = arith.mulf %79, %79 : vector<16x128xf32>
    %cst_27 = arith.constant 8.100000e+01 : f32
    %95 = vector.broadcast %cst_27 : f32 to vector<16x128xf32>
    %96 = arith.mulf %94, %95 : vector<16x128xf32>
    %97 = arith.addf %93, %96 : vector<16x128xf32>
    %cst_28 = arith.constant 2.000000e+00 : f32
    %98 = vector.broadcast %cst_28 : f32 to vector<16x128xf32>
    %99 = arith.mulf %98, %81 : vector<16x128xf32>
    %100 = arith.mulf %99, %74 : vector<16x128xf32>
    %101 = arith.subf %76, %100 : vector<16x128xf32>
    %102 = arith.mulf %81, %81 : vector<16x128xf32>
    %cst_29 = arith.constant 8.100000e+01 : f32
    %103 = vector.broadcast %cst_29 : f32 to vector<16x128xf32>
    %104 = arith.mulf %102, %103 : vector<16x128xf32>
    %105 = arith.addf %101, %104 : vector<16x128xf32>
    %106 = arith.mulf %89, %89 : vector<16x128xf32>
    %107 = arith.mulf %97, %105 : vector<16x128xf32>
    %cst_30 = arith.constant 9.99999974E-6 : f32
    %108 = vector.broadcast %cst_30 : f32 to vector<16x128xf32>
    %109 = arith.addf %107, %108 : vector<16x128xf32>
    %110 = tpu.reciprocal %109 : vector<16x128xf32> -> vector<16x128xf32>
    %111 = arith.mulf %106, %110 : vector<16x128xf32>
    %cst_31 = arith.constant 0.000000e+00 : f32
    %112 = vector.broadcast %cst_31 : f32 to vector<1x128xf32>
    %113 = vector.shape_cast %111 : vector<16x128xf32> to vector<1x16x128xf32>
    %cst_32 = arith.constant dense<0.000000e+00> : vector<1xf32>
    %114 = vector.multi_reduction <add>, %113, %cst_32 [1, 2] : vector<1x16x128xf32> to vector<1xf32>
    %115 = vector.shape_cast %114 : vector<1xf32> to vector<1x1x1xf32>
    %116 = vector.extract %115[0, 0, 0] : f32 from vector<1x1x1xf32>
    %117 = vector.broadcast %116 : f32 to vector<1x128xf32>
    %118 = arith.addf %112, %117 : vector<1x128xf32>
    %c0_33 = arith.constant 0 : index
    %c0_34 = arith.constant 0 : index
    %119 = vector.load %arg5[%c0_33, %c0_34] : memref<1x128xf32, #tpu.memory_space<vmem>>, vector<1x128xf32>
    tpu.vector_store %arg5[%c0_33, %c0_34], %118 {strides = array<i32>} : memref<1x128xf32, #tpu.memory_space<vmem>>, vector<1x128xf32>,
    return
  }
  func.func @transform_0(%arg0: i32) -> (i32, i32) {
    %c0_i32 = arith.constant 0 : i32
    %c0_i32_0 = arith.constant 0 : i32
    return %c0_i32, %arg0 : i32, i32
  }
  func.func @transform_1(%arg0: i32) -> (i32, i32) {
    %c0_i32 = arith.constant 0 : i32
    %c0_i32_0 = arith.constant 0 : i32
    return %c0_i32, %arg0 : i32, i32
  }
  func.func @transform_2(%arg0: i32) -> (i32, i32) {
    %c0_i32 = arith.constant 0 : i32
    %c0_i32_0 = arith.constant 0 : i32
    %c0_i32_1 = arith.constant 0 : i32
    return %c0_i32, %c0_i32_0 : i32, i32
  }
  func.func @transform_3(%arg0: i32) -> (i32, i32) {
    %c0_i32 = arith.constant 0 : i32
    %c0_i32_0 = arith.constant 0 : i32
    %c0_i32_1 = arith.constant 0 : i32
    return %c0_i32, %c0_i32_0 : i32, i32
  }
  func.func @transform_4(%arg0: i32) -> (i32, i32) {
    %c0_i32 = arith.constant 0 : i32
    %c0_i32_0 = arith.constant 0 : i32
    return %c0_i32, %arg0 : i32, i32
  }
}

</mosaic_0001>

<bundles_post_ra>
// kernel: tpu_custom_call.1
= control target key start
LH: loop header
LB: loop body
LE: loop exit
PB: predicated region body
PF: predicated region fallthrough
CT: control target
= control target key end

     0   :  { %9 = vsyncpa [#allocation3], 0  ;;  %s4956_s0 = inlined_call_operand.hbm [shape: f32[16,128], index: 0, kind: input, shape index: {}]   ;;  %s4957_s1 = inlined_call_operand.hbm [shape: f32[16,128], index: 1, kind: input, shape index: {}]   ;;  %s4958_s2 = inlined_call_operand.hbm [shape: f32[16,16], index: 2, kind: input, shape index: {}]   ;;  %s4959_s3 = inlined_call_operand.vmem [shape: f32[1,640], index: 3, kind: input, shape index: {}]   ;;  %s4960_s4 = inlined_call_operand.hbm [shape: f32[1,128], index: 4, kind: output, shape index: {}]  }
   0x1   :  { %10 = vsyncpa [#allocation6], 0 }
   0x2   :  { %11 = vsyncpa [#allocation4], 0  ;;  %s2884_s15 = smov [#allocation5]   ;;  %s2885_s17 = smov [#allocation2]  }
   0x3   :  { %s29_s16 = sshll.u32 %s2884_s15, 4  ;;  %s17_s18 = sshll.u32 %s2885_s17, 4  ;;  %s30_s16 = int_to_ptr.vmem [resolvable:$true] %s29_s16  ;;  %s2925_s18 = int_to_ptr.vmem [resolvable:$true] %s17_s18 }
   0x4   :  { %s2790_s21 = scalar_lea.hbm %s4957_s1, 256 }
   0x5   :  { %p2791_p0 = scmp.ne.s32.totalorder %s4957_s1, %s2790_s21  ;;  %p2794_p1 = scmp.lt.u32.totalorder %s2790_s21, %s4957_s1 }
   0x7   :  { %p2796_p2 = pnand %p2794_p1, %p2791_p0 }
   0x9   :  { %2799 = shalt.err (!%p2796_p2)
}
   0xa   :  { %s2800_s26 = scalar_lea.vmem %s30_s16, 256  ;;  %p2805_p4 = scmp.lt.s32.totalorder %s30_s16, %s30_s16 }
   0xb   :  { %p2801_p3 = scmp.ne.s32.totalorder %s30_s16, %s2800_s26  ;;  %p2806_p5 = scmp.lt.s32.totalorder %s2800_s26, %s2800_s26 }
   0xd   :  { %p2807_p6 = por %p2806_p5, %p2805_p4 }
   0xf   :  { %p2808_p7 = pnand %p2807_p6, %p2801_p3 }
  0x11   :  { %2811 = shalt.err (!%p2808_p7)
}
  0x12   :  { %s2886_s27 = smov 128   ;;  %s2887_s28 = smov 8  }
  0x13   :  { %35 = dma.hbm_to_vmem [thread:$0]  %s4957_s1, 256, %s30_s16, [#allocation6], %s2886_s27, %s2886_s27, %s2887_s28  }
  0x14   :  { %s2812_s7 = scalar_lea.hbm %s4956_s0, 256 }
  0x15   :  { %p2813_p8 = scmp.ne.s32.totalorder %s4956_s0, %s2812_s7  ;;  %p2816_p9 = scmp.lt.u32.totalorder %s2812_s7, %s4956_s0 }
  0x17   :  { %p2818_p10 = pnand %p2816_p9, %p2813_p8 }
  0x19   :  { %2821 = shalt.err (!%p2818_p10)
}
  0x1a   :  { %s2822_s12 = scalar_lea.vmem %s2925_s18, 256  ;;  %p2827_p12 = scmp.lt.s32.totalorder %s2925_s18, %s2925_s18 }
  0x1b   :  { %p2823_p11 = scmp.ne.s32.totalorder %s2925_s18, %s2822_s12  ;;  %p2828_p13 = scmp.lt.s32.totalorder %s2822_s12, %s2822_s12 }
  0x1d   :  { %p2829_p0 = por %p2828_p13, %p2827_p12 }
  0x1f   :  { %p2830_p1 = pnand %p2829_p0, %p2823_p11 }
  0x21   :  { %2833 = shalt.err (!%p2830_p1)
}
  0x22   :  { %23 = dma.hbm_to_vmem [thread:$0]  %s4956_s0, 256, %s2925_s18, [#allocation3], %s2886_s27, %s2886_s27, %s2887_s28  }
  0x23   :  { %s2888_s14 = smov [#allocation7]   ;;  %s2834_s19 = scalar_lea.hbm %s4958_s2, 256 }
  0x24   :  { %s41_s15 = sshll.u32 %s2888_s14, 4  ;;  %p2835_p2 = scmp.ne.s32.totalorder %s4958_s2, %s2834_s19  ;;  %s42_s15 = int_to_ptr.vmem [resolvable:$true] %s41_s15 }
  0x25   :  { %p2838_p3 = scmp.lt.u32.totalorder %s2834_s19, %s4958_s2 }
  0x27   :  { %p2840_p4 = pnand %p2838_p3, %p2835_p2 }
  0x29   :  { %2843 = shalt.err (!%p2840_p4)
}
  0x2a   :  { %s2844_s24 = scalar_lea.vmem %s42_s15, 256  ;;  %p2849_p6 = scmp.lt.s32.totalorder %s42_s15, %s42_s15 }
  0x2b   :  { %p2845_p5 = scmp.ne.s32.totalorder %s42_s15, %s2844_s24  ;;  %p2850_p7 = scmp.lt.s32.totalorder %s2844_s24, %s2844_s24 }
  0x2d   :  { %p2851_p8 = por %p2850_p7, %p2849_p6 }
  0x2f   :  { %p2852_p9 = pnand %p2851_p8, %p2845_p5 }
  0x31   :  { %2855 = shalt.err (!%p2852_p9)
}
  0x32   :  { %47 = dma.hbm_to_vmem [thread:$0]  %s4958_s2, 256, %s42_s15, [#allocation6], %s2886_s27, %s2886_s27, %s2887_s28  }
  0x33   :  { %2878 = dma.done.wait [#allocation3], 256  }
  0x34   :  { %2879 = vsyncadd [#allocation3], 4294967040 }
  0x35   :  { %2880 = dma.done.wait [#allocation6], 512  }
  0x36   :  { %2881 = vsyncadd [#allocation6], 4294966784  ;;  %v2889_v0 = vmov 0.0   ;;  %vm72_vm0 = vcmask 130048   ;;  %v2979_v1 = vld [vmem:[#allocation5] sm:$0xff]  ;;  %v2981_v2 = vld [vmem:[#allocation5 + $0x8] sm:$0xff]  ;;  %v1662_v13 = vlaneseq }
  0x37   :  { %254 = vmatprep.mubr.f32.mxu0 %v2889_v0  ;;  %147 = vmatprep.mubr.f32.mxu1 %v2889_v0  ;;  %v2983_v3 = vld [vmem:[#allocation2] sm:$0xff]  ;;  %v79_v4 = vand.u32 4294901760, %v2979_v1  ;;  %v83_v5 = vand.u32 4294901760, %v2981_v2  ;;  %v2987_v6 = vld [vmem:[#allocation2 + $0x8] sm:$0xff]  ;;  %v68_v34 = vmul.f32 %v2979_v1, %v2979_v1  ;;  %v69_v35 = vmul.f32 %v2981_v2, %v2981_v2  ;;  %s2891_s26 = smov 127   ;;  %s2892_s27 = smov 2  }
  0x38   :  { %v81_v7 = vand.u32 4294901760, %v2983_v3  ;;  %v63_v8 = vld [vmem:[#allocation7] sm:$0xff]  ;;  %v64_v9 = vld [vmem:[#allocation7 + $0x8] sm:$0xff]  ;;  %v85_v10 = vand.u32 4294901760, %v2987_v6  ;;  %v3020_v27 = vshrl.u32 %v1662_v13, 7  ;;  %v66_v46 = vmul.f32 %v2983_v3, %v2983_v3  ;;  %s2893_s28 = smov 126  }
  0x39   :  { %v74_v11 = vsel %vm72_vm0, %v63_v8, 0  ;;  %v77_v12 = vsel %vm72_vm0, %v64_v9, 0  ;;  %v2992_v14 = vsub.f32 %v2979_v1, %v79_v4  ;;  %v2995_v15 = vsub.f32 %v2981_v2, %v83_v5  ;;  %v65_v8 = vld [vmem:[%s4959_s3] sm:$0x1f]  ;;  %s2890_s3 = smov 1   ;;  %s2894_s29 = smov 3  }
  0x3a   :  { %v2997_v16 = vpack.c.bf16 %v83_v5, %v79_v4  ;;  %v3000_v17 = vsub.f32 %v2983_v3, %v81_v7  ;;  %v3003_v18 = vsub.f32 %v2987_v6, %v85_v10  ;;  %v3005_v19 = vpack.c.bf16 %v85_v10, %v81_v7  ;;  %s2895_s30 = smov 125   ;;  %s2896_s5 = smov 4  }
  0x3b   :  { %v172_v20 = vand.u32 4294901760, %v2992_v14  ;;  %v184_v21 = vand.u32 4294901760, %v2995_v15  ;;  %v3011_v23 = vand.u32 4294901760, %v74_v11  ;;  %v2652_v25 = vpack.c.bf16 %v2995_v15, %v2992_v14  ;;  %s2897_s6 = smov 124   ;;  %s2899_s7 = smov [#allocation8]  }
  0x3c   :  { %2645 = vmatprep.subr.bf16.mxu1 %v2997_v16  ;;  %v178_v22 = vand.u32 4294901760, %v3000_v17  ;;  %v190_v24 = vand.u32 4294901760, %v3003_v18  ;;  %v3017_v26 = vand.u32 4294901760, %v77_v12  ;;  %v619_v42 = vand.u32 4294901760, %v68_v34  ;;  %s2568_s8 = sshll.u32 %s2899_s7, 4  ;;  %s2569_s8 = int_to_ptr.vmem [resolvable:$true] %s2568_s8 }
  0x3d   :  { %2647 = vmatpush1.bf16.msra.mxu1 %v3005_v19  ;;  %v173_v28 = vsub.f32 %v2992_v14, %v172_v20  ;;  %v185_v29 = vsub.f32 %v2995_v15, %v184_v21  ;;  %v3032_v31 = vsub.f32 %v74_v11, %v3011_v23  ;;  %v623_v43 = vand.u32 4294901760, %v69_v35  ;;  %s2856_s10 = scalar_lea.vmem %s2569_s8, 16  ;;  %s2860_s11 = scalar_lea.vmem %s2569_s8, 32 }
  0x3e   :  { %v179_v30 = vsub.f32 %v3000_v17, %v178_v22  ;;  %v191_v32 = vsub.f32 %v3003_v18, %v190_v24  ;;  %v3038_v33 = vsub.f32 %v77_v12, %v3017_v26  ;;  %v67_v47 = vmul.f32 %v2987_v6, %v2987_v6  ;;  %p2857_p10 = scmp.ne.s32.totalorder %s2569_s8, %s2856_s10  ;;  %p2861_p11 = scmp.lt.s32.totalorder %s2569_s8, %s2569_s8 }
  0x3f   :  { %v174_v36 = vand.u32 4294901760, %v173_v28  ;;  %v186_v37 = vand.u32 4294901760, %v185_v29  ;;  %v3045_v39 = vand.u32 4294901760, %v3032_v31  ;;  %v3058_v50 = vpack.c.bf16 %v623_v43, %v619_v42  ;;  %p2862_p12 = scmp.lt.s32.totalorder %s2860_s11, %s2856_s10 }
  0x40   :  { %v180_v38 = vand.u32 4294901760, %v179_v30  ;;  %v192_v40 = vand.u32 4294901760, %v191_v32  ;;  %v3048_v41 = vand.u32 4294901760, %v3038_v33  ;;  %v3060_v51 = vsub.f32 %v68_v34, %v619_v42 }
  0x41   :  { %v2648_v44 = vpack.c.bf16 %v186_v37, %v174_v36  ;;  %v151_v45 = vsub.f32 %v3032_v31, %v3045_v39  ;;  %v3064_v53 = vsub.f32 %v69_v35, %v623_v43  ;;  %v621_v54 = vand.u32 4294901760, %v66_v46  ;;  %p2863_p13 = por %p2862_p12, %p2861_p11 }
  0x42   :  { %v2650_v48 = vpack.c.bf16 %v192_v40, %v180_v38  ;;  %v162_v49 = vsub.f32 %v3038_v33, %v3048_v41  ;;  %v625_v55 = vand.u32 4294901760, %v67_v47  ;;  %v2654_v56 = vpack.c.bf16 %v3003_v18, %v3000_v17 }
  0x43   :  { %2649 = vmatprep.subr.bf16.mxu0 %v2648_v44  ;;  %v3062_v52 = vand.u32 4294901760, %v151_v45  ;;  %2716 = vmatprep.subr.bf16.mxu1 %v2648_v44  ;;  %v712_v57 = vand.u32 4294901760, %v3060_v51  ;;  %v3072_v59 = vsub.f32 %v66_v46, %v621_v54  ;;  %v724_v61 = vand.u32 4294901760, %v3064_v53  ;;  %p2864_p0 = pnand %p2863_p13, %p2857_p10 }
  0x44   :  { %2651 = vmatpush1.bf16.msra.mxu0 %v2650_v48  ;;  %v3070_v58 = vand.u32 4294901760, %v162_v49  ;;  %v3074_v60 = vsub.f32 %v67_v47, %v625_v55  ;;  %v1672_v62 = vsub.s32 2, %v3020_v27  ;;  %v3094_v9 = vsub.s32 0, %v3020_v27 }
  0x45   :  { %2653 = vmatprep.subr.bf16.mxu0 %v2652_v25  ;;  %153 = vmatmul.mubr.f32.vlgmr.msra.gmra.mrb[0].mxu1 %v3062_v52  ;;  %v713_v63 = vsub.f32 %v3060_v51, %v712_v57  ;;  %v725_v4 = vsub.f32 %v3064_v53, %v724_v61  ;;  %v718_v5 = vand.u32 4294901760, %v3072_v59  ;;  %v1676_v29 = vsub.s32 3, %v3020_v27 }
  0x46   :  { %158 = vmatprep.mubr.f32.mxu1 %v2889_v0  ;;  %2717 = vmatpush1.bf16.msra.mxu1 %v2650_v48  ;;  %v730_v7 = vand.u32 4294901760, %v3074_v60  ;;  %v3105_v12 = vrot.slane %v65_v8, %v1672_v62  ;;  %v3111_v30 = vrot.slane %v65_v8, %v3094_v9  ;;  %v70_v32 = vmul.f32 %v2979_v1, %v2983_v3 }
  0x47   :  { %256 = vmatmul.mubr.f32.vlgmr.msra.gmra.mrb[0].mxu0 %v3011_v23  ;;  %2669 = vmatprep.subr.bf16.mxu1 %v3058_v50  ;;  %v719_v10 = vsub.f32 %v3072_v59, %v718_v5  ;;  %v714_v25 = vand.u32 4294901760, %v713_v63  ;;  %v726_v28 = vand.u32 4294901760, %v725_v4  ;;  %v71_v34 = vmul.f32 %v2981_v2, %v2987_v6 }
  0x48   :  { %2655 = vmatpush1.bf16.msra.mxu0 %v2654_v56  ;;  %341 = vmatprep.mubr.f32.mxu0 %v2889_v0  ;;  %v731_v11 = vsub.f32 %v3074_v60, %v730_v7  ;;  %v2660_v35 = vpack.c.bf16 %v184_v21, %v172_v20  ;;  %v1668_v36 = vsub.s32 1, %v3020_v27  ;;  %v3122_v37 = vpack.c.bf16 %v625_v55, %v621_v54 }
  0x49   :  { %164 = vmatmul.mubr.f32.gmra.mrb[2].mxu1 %v3070_v58  ;;  %2657 = vmatprep.subr.bf16.mxu0 %v2997_v16  ;;  %v720_v38 = vand.u32 4294901760, %v719_v10  ;;  %v2672_v1 = vpack.c.bf16 %v726_v28, %v714_v25  ;;  %v3129_v2 = vrot.slane %v65_v8, %v1676_v29  ;;  %v1160_v3 = vand.u32 4294901760, %v70_v32 }
  0x4a   :  { %261 = vmatprep.mubr.f32.mxu1 %v2889_v0  ;;  %1691 = vrot.lane.b32.xlu1 %v3105_v12, %s2890_s3  ;;  %v732_v40 = vand.u32 4294901760, %v731_v11  ;;  %v1163_v6 = vand.u32 4294901760, %v71_v34  ;;  %v3132_v14 = vrot.slane %v65_v8, %v1668_v36  ;;  %v2676_v20 = vpack.c.bf16 %v3064_v53, %v3060_v51 }
  0x4b   :  { %1687 = vrot.lane.b32.xlu0 %v3111_v30, %s2890_s3  ;;  %v1680_v21 = vsub.s32 4, %v3020_v27  ;;  %v2662_v42 = vpack.c.bf16 %v190_v24, %v178_v22  ;;  %v3148_v43 = vsub.f32 %v70_v32, %v1160_v3  ;;  %v2678_v24 = vpack.c.bf16 %v3074_v60, %v3072_v59 }
  0x4c   :  { %v2674_v15 = vpack.c.bf16 %v732_v40, %v720_v38  ;;  %v3150_v44 = vsub.f32 %v71_v34, %v1163_v6  ;;  %v2686_v49 = vpack.c.bf16 %v730_v7, %v718_v5  ;;  %v3362_v25 = vand.u32 127, %v1662_v13 }
  0x4d   :  { %v3156_v17 = vrot.slane %v65_v8, %v1680_v21  ;;  %v1249_v18 = vand.u32 4294901760, %v3148_v43 }
  0x4e   :  { %1693 = vrot.lane.b32.xlu1 %v3129_v2, %s2890_s3  ;;  %v1256_v22 = vand.u32 4294901760, %v3150_v44  ;;  %v2700_v51 = vpack.c.bf16 %v3150_v44, %v3148_v43  ;;  %vm5013_vm1 = vcmp.lt.s32.totalorder %v3362_v25, 126  ;;  %vm5006_vm2 = vcmp.lt.s32.totalorder %v3362_v25, 4 }
  0x4f   :  { %344 = vmatmul.mubr.f32.vlgmr.msra.gmra.mrb[0].mxu0 %v3032_v31  ;;  %1689 = vrot.lane.b32.xlu0 %v3132_v14, %s2890_s3  ;;  %v1250_v27 = vsub.f32 %v3148_v43, %v1249_v18  ;;  %vm5025_vm3 = vcmp.lt.s32.totalorder %v3362_v25, 3  ;;  %vm5007_vm4 = vcmp.lt.s32.totalorder %v3362_v25, 124  ;;  %vm5027_vm5 = vcmp.lt.s32.totalorder %v3362_v25, 125 }
  0x50   :  { %2659 = vmatpush1.bf16.msra.mxu0 %v3005_v19  ;;  %349 = vmatprep.mubr.f32.mxu0 %v2889_v0  ;;  %v1257_v45 = vsub.f32 %v3150_v44, %v1256_v22  ;;  %vm5026_vm10 = vcmp.lt.s32.totalorder %v3362_v25, 1  ;;  %vm5012_vm11 = vcmp.lt.s32.totalorder %v3362_v25, 127  ;;  %vm5014_vm12 = vcmp.lt.s32.totalorder %v3362_v25, 2 }
  0x51   :  { %263 = vmatmul.mubr.f32.vlgmr.msra.gmra.mrb[2].mxu1 %v3017_v26  ;;  %2661 = vmatprep.subr.bf16.mxu0 %v2660_v35  ;;  %v1251_v46 = vand.u32 4294901760, %v1250_v27 }
  0x52   :  { %2671 = vmatpush1.bf16.msra.mxu1 %v3122_v37  ;;  %687 = vmatprep.mubr.f32.mxu1 %v2889_v0  ;;  %v1258_v47 = vand.u32 4294901760, %v1257_v45 }
  0x53   :  { %352 = vmatmul.mubr.f32.gmra.mrb[2].mxu0 %v3038_v33  ;;  %2673 = vmatprep.subr.bf16.mxu1 %v2672_v1 }
  0x54   :  { %426 = vmatprep.mubr.f32.mxu0 %v2889_v0  ;;  %1792 = vrot.lane.b32.xlu1 %v3132_v14, %s2891_s26  ;;  %v2696_v48 = vpack.c.bf16 %v1258_v47, %v1251_v46 }
  0x55   :  { %693 = vmatmul.mubr.f32.vlgmr.msra.gmra.mrb[4].mxu1 %v3062_v52  ;;  %1695 = vrot.lane.b32.xlu0 %v3156_v17, %s2890_s3 }
  0x56   :  { %698 = vmatprep.mubr.f32.mxu1 %v2889_v0  ;;  %2675 = vmatpush1.bf16.msra.mxu1 %v2674_v15 }
  0x57   :  { %430 = vmatmul.mubr.f32.vlgmr.msra.gmra.mrb[0].mxu0 %v3045_v39  ;;  %2677 = vmatprep.subr.bf16.mxu1 %v2676_v20 }
  0x58   :  { %2663 = vmatpush1.bf16.msra.mxu0 %v2662_v42  ;;  %435 = vmatprep.mubr.f32.mxu0 %v2889_v0 }
  0x59   :  { %704 = vmatmul.mubr.f32.gmra.mrb[6].mxu1 %v3070_v58  ;;  %2665 = vmatprep.subr.bf16.mxu0 %v2997_v16  ;;  %v3173_v16 = vpack.c.bf16 %v1163_v6, %v1160_v3 }
  0x5a   :  { %794 = vmatprep.mubr.f32.mxu1 %v2889_v0  ;;  %1891 = vrot.lane.b32.xlu1 %v3111_v30, %s2892_s27 }
  0x5b   :  { %439 = vmatmul.mubr.f32.gmra.mrb[2].mxu0 %v3048_v41  ;;  %1790 = vrot.lane.b32.xlu0 %v3111_v30, %s2891_s26 }
  0x5c   :  { %521 = vmatprep.mubr.f32.mxu0 %v2889_v0 }
  0x5d   :  { %796 = vmatmul.mubr.f32.vlgmr.msra.gmra.mrb[4].mxu1 %v3011_v23 }
  0x5e   :  { %801 = vmatprep.mubr.f32.mxu1 %v2889_v0  ;;  %2679 = vmatpush1.bf16.msra.mxu1 %v2678_v24 }
  0x5f   :  { %523 = vmatmul.mubr.f32.vlgmr.msra.gmra.mrb[0].mxu0 %v3011_v23  ;;  %2681 = vmatprep.subr.bf16.mxu1 %v3058_v50 }
  0x60   :  { %2667 = vmatpush1.bf16.msra.mxu0 %v3005_v19  ;;  %528 = vmatprep.mubr.f32.mxu0 %v2889_v0  ;;  %v2684_v19 = vpack.c.bf16 %v724_v61, %v712_v57 }
  0x61   :  { %803 = vmatmul.mubr.f32.gmra.mrb[6].mxu1 %v3017_v26  ;;  %2693 = vmatprep.subr.bf16.mxu0 %v3173_v16 }
  0x62   :  { %881 = vmatprep.mubr.f32.mxu1 %v2889_v0  ;;  %1899 = vrot.lane.b32.xlu1 %v3156_v17, %s2892_s27 }
  0x63   :  { %530 = vmatmul.mubr.f32.gmra.mrb[2].mxu0 %v3017_v26  ;;  %1794 = vrot.lane.b32.xlu0 %v3105_v12, %s2891_s26 }
  0x64   :  { %604 = vmatprep.mubr.f32.mxu0 %v2889_v0 }
  0x65   :  { %884 = vmatmul.mubr.f32.vlgmr.msra.gmra.mrb[4].mxu1 %v3032_v31 }
  0x66   :  { %889 = vmatprep.mubr.f32.mxu1 %v2889_v0  ;;  %2683 = vmatpush1.bf16.msra.mxu1 %v3122_v37 }
  0x67   :  { %606 = vmatmul.mubr.f32.vlgmr.msra.gmra.mrb[0].mxu0 %v3011_v23  ;;  %2685 = vmatprep.subr.bf16.mxu1 %v2684_v19 }
  0x68   :  { %611 = vmatprep.mubr.f32.mxu0 %v2889_v0  ;;  %2695 = vmatpush3.bf16.msra.mxu0 %v3173_v16 }
  0x69   :  { %892 = vmatmul.mubr.f32.gmra.mrb[6].mxu1 %v3038_v33  ;;  %2697 = vmatprep.subr.bf16.mxu0 %v2696_v48 }
  0x6a   :  { %966 = vmatprep.mubr.f32.mxu1 %v2889_v0  ;;  %1992 = vrot.lane.b32.xlu1 %v3111_v30, %s2893_s28 }
  0x6b   :  { %613 = vmatmul.mubr.f32.gmra.mrb[2].mxu0 %v3017_v26  ;;  %1893 = vrot.lane.b32.xlu0 %v3132_v14, %s2892_s27 }
  0x6c   :  { %2606 = vmatprep.mubr.f32.mxu0 %v3062_v52 }
  0x6d   :  { %970 = vmatmul.mubr.f32.vlgmr.msra.gmra.mrb[4].mxu1 %v3045_v39 }
  0x6e   :  { %975 = vmatprep.mubr.f32.mxu1 %v2889_v0  ;;  %2687 = vmatpush1.bf16.msra.mxu1 %v2686_v49 }
  0x6f   :  { %2689 = vmatprep.subr.bf16.mxu1 %v3058_v50  ;;  %2607 = vmatmul.mubr.f32.vlgmr.msra.gmra.mrb[4].mxu0 %v3070_v58  ;;  %v2708_v50 = vpack.c.bf16 %v1256_v22, %v1249_v18 }
  0x70   :  { %2699 = vmatpush3.bf16.msra.mxu0 %v2696_v48  ;;  %2613 = vmatprep.mubr.f32.mxu0 %v3011_v23 }
  0x71   :  { %979 = vmatmul.mubr.f32.gmra.mrb[6].mxu1 %v3048_v41  ;;  %2701 = vmatprep.subr.bf16.mxu0 %v2700_v51 }
  0x72   :  { %1061 = vmatprep.mubr.f32.mxu1 %v2889_v0  ;;  %1996 = vrot.lane.b32.xlu1 %v3105_v12, %s2893_s28 }
  0x73   :  { %1994 = vrot.lane.b32.xlu0 %v3132_v14, %s2893_s28 }
  0x75   :  { %1063 = vmatmul.mubr.f32.vlgmr.msra.gmra.mrb[4].mxu1 %v3011_v23 }
  0x76   :  { %1068 = vmatprep.mubr.f32.mxu1 %v2889_v0  ;;  %2691 = vmatpush1.bf16.msra.mxu1 %v3122_v37 }
  0x77   :  { %2614 = vmatmul.mubr.f32.vlgmr.msra.gmra.mrb[4].mxu0 %v3017_v26  ;;  %1798 = vrot.lane.b32.xlu1 %v3156_v17, %s2891_s26 }
  0x78   :  { %2703 = vmatpush3.bf16.msra.mxu0 %v2700_v51  ;;  %2620 = vmatprep.mubr.f32.mxu0 %v3032_v31 }
  0x79   :  { %1070 = vmatmul.mubr.f32.gmra.mrb[6].mxu1 %v3017_v26  ;;  %2705 = vmatprep.subr.bf16.mxu0 %v3173_v16 }
  0x7a   :  { %1144 = vmatprep.mubr.f32.mxu1 %v2889_v0  ;;  %1796 = vrot.lane.b32.xlu0 %v3129_v2, %s2891_s26 }
  0x7b   :  { %2095 = vrot.lane.b32.xlu1 %v3132_v14, %s2894_s29 }
  0x7d   :  { %1146 = vmatmul.mubr.f32.vlgmr.msra.gmra.mrb[4].mxu1 %v3011_v23 }
  0x7e   :  { %1151 = vmatprep.mubr.f32.mxu1 %v2889_v0  ;;  %2093 = vrot.lane.b32.xlu0 %v3111_v30, %s2894_s29 }
  0x7f   :  { %2621 = vmatmul.mubr.f32.vlgmr.msra.gmra.mrb[4].mxu0 %v3038_v33  ;;  %1895 = vrot.lane.b32.xlu1 %v3105_v12, %s2892_s27 }
  0x80   :  { %2707 = vmatpush3.bf16.msra.mxu0 %v3173_v16  ;;  %2627 = vmatprep.mubr.f32.mxu0 %v3045_v39 }
  0x81   :  { %1153 = vmatmul.mubr.f32.gmra.mrb[6].mxu1 %v3017_v26  ;;  %2709 = vmatprep.subr.bf16.mxu0 %v2708_v50 }
  0x82   :  { %2101 = vrot.lane.b32.xlu0 %v3156_v17, %s2894_s29 }
  0x83   :  { %2194 = vrot.lane.b32.xlu1 %v3111_v30, %s2895_s30 }
  0x86   :  { %1897 = vrot.lane.b32.xlu0 %v3129_v2, %s2892_s27 }
  0x87   :  { %2628 = vmatmul.mubr.f32.vlgmr.msra.gmra.mrb[4].mxu0 %v3048_v41  ;;  %2198 = vrot.lane.b32.xlu1 %v3105_v12, %s2895_s30 }
  0x88   :  { %2711 = vmatpush3.bf16.msra.mxu0 %v2708_v50  ;;  %2634 = vmatprep.mubr.f32.mxu0 %v3011_v23 }
  0x89   :  { %2713 = vmatprep.subr.bf16.mxu0 %v3173_v16 }
  0x8a   :  { %2196 = vrot.lane.b32.xlu0 %v3132_v14, %s2895_s30 }
  0x8b   :  { %2000 = vrot.lane.b32.xlu1 %v3156_v17, %s2893_s28 }
  0x8e   :  { %1998 = vrot.lane.b32.xlu0 %v3129_v2, %s2893_s28 }
  0x8f   :  { %2635 = vmatmul.mubr.f32.vlgmr.msra.gmra.mrb[4].mxu0 %v3017_v26  ;;  %2297 = vrot.lane.b32.xlu1 %v3132_v14, %s2896_s5 }
  0x90   :  { %2715 = vmatpush3.bf16.msra.mxu0 %v3173_v16  ;;  %2641 = vmatprep.mubr.f32.mxu0 %v3011_v23 }
  0x92   :  { %2295 = vrot.lane.b32.xlu0 %v3111_v30, %s2896_s5 }
  0x93   :  { %2097 = vrot.lane.b32.xlu1 %v3105_v12, %s2894_s29 }
  0x96   :  { %2303 = vrot.lane.b32.xlu0 %v3156_v17, %s2896_s5 }
  0x97   :  { %2642 = vmatmul.mubr.f32.vlgmr.msra.gmra.mrb[4].mxu0 %v3017_v26  ;;  %2396 = vrot.lane.b32.xlu1 %v3111_v30, %s2897_s6 }
  0x9a   :  { %2099 = vrot.lane.b32.xlu0 %v3129_v2, %s2894_s29 }
  0x9b   :  { %2400 = vrot.lane.b32.xlu1 %v3105_v12, %s2897_s6 }
  0x9e   :  { %2398 = vrot.lane.b32.xlu0 %v3132_v14, %s2897_s6 }
  0x9f   :  { %2202 = vrot.lane.b32.xlu1 %v3156_v17, %s2895_s30 }
  0xa2   :  { %2200 = vrot.lane.b32.xlu0 %v3129_v2, %s2895_s30 }
  0xa3   :  { %2301 = vrot.lane.b32.xlu1 %v3129_v2, %s2896_s5 }
  0xa6   :  { %2299 = vrot.lane.b32.xlu0 %v3105_v12, %s2896_s5 }
  0xa7   :  { %2404 = vrot.lane.b32.xlu1 %v3156_v17, %s2897_s6 }
  0xaa   :  { %2402 = vrot.lane.b32.xlu0 %v3129_v2, %s2897_s6 }
  0xbc   :  { %v3311_v0 = vpop.permute.xlu1 %1691 }
  0xbd   :  { %v3313_v23 = vpop.permute.xlu0 %1687 }
  0xc0   :  { %v3315_v26 = vpop.permute.xlu1 %1693 }
  0xc1   :  { %v3317_v31 = vpop.permute.xlu0 %1689 }
  0xc6   :  { %v3319_v33 = vpop.permute.xlu1 %1792 }
  0xc7   :  { %v3321_v39 = vpop.permute.xlu0 %1695 }
  0xcc   :  { %v3323_v41 = vpop.permute.xlu1 %1891 }
  0xcd   :  { %v3325_v52 = vpop.permute.xlu0 %1790 }
  0xd4   :  { %v3327_v53 = vpop.permute.xlu1 %1899 }
  0xd5   :  { %v3329_v54 = vpop.permute.xlu0 %1794 }
  0xdc   :  { %v3331_v55 = vpop.permute.xlu1 %1992 }
  0xdd   :  { %5051 = vst [vmem:[#allocation12_spill] sm:$0xff] %v3331_v55  ;;  %v3333_v56 = vpop.permute.xlu0 %1893 }
  0xe4   :  { %v3335_v57 = vpop.permute.xlu1 %1996 }
  0xe5   :  { %5052 = vst [vmem:[#allocation13_spill] sm:$0xff] %v3335_v57  ;;  %v3337_v58 = vpop.permute.xlu0 %1994 }
  0xe6   :  { %5053 = vst [vmem:[#allocation14_spill] sm:$0xff] %v3337_v58 }
  0xe9   :  { %v3339_v59 = vpop.permute.xlu1 %1798 }
  0xec   :  { %v3341_v60 = vpop.permute.xlu0 %1796 }
  0xed   :  { %5054 = vst [vmem:[#allocation15_spill] sm:$0xff] %v3341_v60  ;;  %v3343_v61 = vpop.permute.xlu1 %2095 }
  0xf0   :  { %v3345_v62 = vpop.permute.xlu0 %2093 }
  0xf1   :  { %5055 = vst [vmem:[#allocation16_spill] sm:$0xff] %v3345_v62  ;;  %v3347_v63 = vpop.permute.xlu1 %1895 }
  0xf2   :  { %5056 = vst [vmem:[#allocation17_spill] sm:$0xff] %v3347_v63 }
  0xf4   :  { %v3349_v4 = vpop.permute.xlu0 %2101 }
  0xf5   :  { %5057 = vst [vmem:[#allocation18_spill] sm:$0xff] %v3349_v4  ;;  %v3351_v5 = vpop.permute.xlu1 %2194  ;;  %v1905_v4 = vsel %vm5014_vm12, %v3323_v41, %v3333_v56 }
  0xf6   :  { %5058 = vst [vmem:[#allocation19_spill] sm:$0xff] %v3351_v5  ;;  %v5097_v5 = vmov 0  ;;  %vm1908_vm0 = vcmp.eq.f32.partialorder %v1905_v4, %v3132_v14 }
  0xf8   :  { %v3353_v7 = vpop.permute.xlu0 %1897 }
  0xf9   :  { %5059 = vst [vmem:[#allocation20_spill] sm:$0xff] %v3353_v7  ;;  %v3355_v8 = vpop.permute.xlu1 %2198 }
  0xfc   :  { %v3357_v10 = vpop.permute.xlu0 %2196 }
  0xfd   :  { %v3359_v11 = vpop.permute.xlu1 %2000 }
  0xfe   :  { %5060 = vst [vmem:[#allocation21_spill] sm:$0xff] %v3359_v11 }
 0x100   :  { %v3365_v28 = vpop.permute.xlu0 %1998 }
 0x101   :  { %5061 = vst [vmem:[#allocation22_spill] sm:$0xff] %v3365_v28  ;;  %v2298_v29 = vpop.permute.xlu1 %2297  ;;  %v3371_v32 = vsel %vm5013_vm1, %v3365_v28, %v3359_v11 }
 0x102   :  { %5062 = vst [vmem:[#allocation23_spill] sm:$0xff] %v3371_v32 }
 0x104   :  { %v2296_v34 = vpop.permute.xlu0 %2295 }
 0x105   :  { %v3374_v35 = vpop.permute.xlu1 %2097  ;;  %v3378_v13 = vsel %vm5006_vm2, %v2296_v34, %v2298_v29 }
 0x106   :  { %vm2312_vm6 = vcmp.eq.f32.partialorder %v3378_v13, %v3132_v14 }
 0x108   :  { %v2304_v36 = vpop.permute.xlu0 %2303 }
 0x109   :  { %v3380_v37 = vpop.permute.xlu1 %2396  ;;  %v3384_v38 = vsel %vm5006_vm2, %v2304_v36, %v2296_v34 }
 0x10a   :  { %5063 = vst [vmem:[#allocation24_spill] sm:$0xff] %v3380_v37  ;;  %5064 = vst [vmem:[#allocation25_spill] sm:$0xff] %v3384_v38 }
 0x10c   :  { %v3387_v40 = vpop.permute.xlu0 %2099 }
 0x10d   :  { %5065 = vst [vmem:[#allocation26_spill] sm:$0xff] %v3387_v40  ;;  %v3389_v1 = vpop.permute.xlu1 %2400  ;;  %v3395_v3 = vsel %vm5025_vm3, %v3374_v35, %v3387_v40 }
 0x10e   :  { %5066 = vst [vmem:[#allocation27_spill] sm:$0xff] %v3389_v1  ;;  %5067 = vst [vmem:[#allocation28_spill] sm:$0xff] %v3395_v3 }
 0x110   :  { %v2399_v6 = vpop.permute.xlu0 %2398 }
 0x111   :  { %v3398_v15 = vpop.permute.xlu1 %2202  ;;  %v3403_v20 = vsel %vm5007_vm4, %v2399_v6, %v3389_v1  ;;  %v3408_v21 = vsel %vm5007_vm4, %v3380_v37, %v2399_v6  ;;  %v4974_v37 = vmov 0  }
 0x112   :  { %5068 = vst [vmem:[#allocation29_spill] sm:$0xff] %v3398_v15  ;;  %vm2412_vm7 = vcmp.eq.f32.partialorder %v3408_v21, %v3111_v30 }
 0x114   :  { %v2201_v43 = vpop.permute.xlu0 %2200 }
 0x115   :  { %v3414_v18 = vsel %vm5027_vm5, %v2201_v43, %v3398_v15  ;;  %v3419_v22 = vsel %vm5027_vm5, %v3355_v8, %v2201_v43  ;;  %v2302_v24 = vpop.permute.xlu1 %2301  ;;  %v2347_v15 = vsel %vm2312_vm6, 1, %v4974_v37 }
 0x116   :  { %5069 = vst [vmem:[#allocation30_spill] sm:$0xff] %v3414_v18  ;;  %5070 = vst [vmem:[#allocation31_spill] sm:$0xff] %v3419_v22  ;;  %v3423_v16 = vsel %vm5006_vm2, %v2302_v24, %v2304_v36  ;;  %v2358_v13 = vrot.slane %v2347_v15, %v3094_v9 }
 0x117   :  { %5071 = vst [vmem:[#allocation32_spill] sm:$0xff] %v3423_v16 }
 0x118   :  { %v154_v42 = vpop.f32.mrb[0].mxu1  ;;  %v2300_v27 = vpop.permute.xlu0 %2299  ;;  %vm3648_vm8 = vcmp.eq.s32.totalorder %v2358_v13, 1 }
 0x119   :  { %v156_v44 = vpop.f32.mrb[1].mxu1  ;;  %v3427_v45 = vsel %vm5006_vm2, %v2298_v29, %v2300_v27  ;;  %v3431_v46 = vsel %vm5006_vm2, %v2300_v27, %v2302_v24 }
 0x11a   :  { %5072 = vst [vmem:[#allocation33_spill] sm:$0xff] %v3431_v46 }
 0x124   :  { %v264_v47 = vpop.f32.mrb[2].mxu1 }
 0x125   :  { %v266_v19 = vpop.f32.mrb[3].mxu1 }
 0x13a   :  { %v607_v48 = vpop.f32.mrb[0].mxu0 }
 0x13b   :  { %v3433_v49 = vadd.f32 %v607_v48, %v154_v42  ;;  %v609_v51 = vpop.f32.mrb[1].mxu0  ;;  %v3567_v48 = vpop.permute.xlu0 %2402 }
 0x13c   :  { %v3435_v50 = vadd.f32 %v609_v51, %v156_v44  ;;  %5080 = vst [vmem:[#allocation41_spill] sm:$0xff] %v3567_v48 }
 0x13d   :  { %5073 = vst [vmem:[#allocation34_spill] sm:$0xff] %v3433_v49  ;;  %1811 = vrot.lane.b32.xlu0 %v3433_v49, %s2891_s26  ;;  %1710 = vrot.lane.b32.xlu1 %v3433_v49, %s2890_s3 }
 0x13e   :  { %v614_v29 = vpop.f32.mrb[2].mxu0 }
 0x13f   :  { %v3441_v34 = vadd.f32 %v614_v29, %v264_v47  ;;  %v616_v36 = vpop.f32.mrb[3].mxu0 }
 0x140   :  { %v3443_v6 = vadd.f32 %v616_v36, %v266_v19  ;;  %v3565_v19 = vpop.permute.xlu1 %2404 }
 0x141   :  { %5074 = vst [vmem:[#allocation35_spill] sm:$0xff] %v3441_v34  ;;  %2013 = vrot.lane.b32.xlu0 %v3433_v49, %s2893_s28  ;;  %1912 = vrot.lane.b32.xlu1 %v3433_v49, %s2892_s27  ;;  %5079 = vst [vmem:[#allocation40_spill] sm:$0xff] %v3565_v19 }
 0x145   :  { %2215 = vrot.lane.b32.xlu0 %v3433_v49, %s2895_s30  ;;  %2114 = vrot.lane.b32.xlu1 %v3433_v49, %s2894_s29 }
 0x149   :  { %2316 = vrot.lane.b32.xlu0 %v3433_v49, %s2896_s5  ;;  %1714 = vrot.lane.b32.xlu1 %v3435_v50, %s2890_s3 }
 0x14d   :  { %2417 = vrot.lane.b32.xlu0 %v3433_v49, %s2897_s6  ;;  %1916 = vrot.lane.b32.xlu1 %v3435_v50, %s2892_s27 }
 0x150   :  { %v3461_v42 = vpop.f32.mrb[4].mxu1 }
 0x151   :  { %1815 = vrot.lane.b32.xlu0 %v3435_v50, %s2891_s26  ;;  %2118 = vrot.lane.b32.xlu1 %v3435_v50, %s2894_s29  ;;  %v3467_v43 = vpop.f32.mrb[5].mxu1 }
 0x152   :  { %5075 = vst [vmem:[#allocation36_spill] sm:$0xff] %v3467_v43 }
 0x154   :  { %v3469_v44 = vpop.f32.mrb[6].mxu1 }
 0x155   :  { %2017 = vrot.lane.b32.xlu0 %v3435_v50, %s2893_s28  ;;  %1813 = vrot.lane.b32.xlu1 %v3441_v34, %s2891_s26  ;;  %v3475_v24 = vpop.f32.mrb[7].mxu1 }
 0x156   :  { %5076 = vst [vmem:[#allocation37_spill] sm:$0xff] %v3475_v24 }
 0x159   :  { %2219 = vrot.lane.b32.xlu0 %v3435_v50, %s2895_s30  ;;  %2015 = vrot.lane.b32.xlu1 %v3441_v34, %s2893_s28 }
 0x15d   :  { %2320 = vrot.lane.b32.xlu0 %v3435_v50, %s2896_s5  ;;  %2217 = vrot.lane.b32.xlu1 %v3441_v34, %s2895_s30 }
 0x161   :  { %2421 = vrot.lane.b32.xlu0 %v3435_v50, %s2897_s6  ;;  %2318 = vrot.lane.b32.xlu1 %v3441_v34, %s2896_s5 }
 0x165   :  { %2419 = vrot.lane.b32.xlu1 %v3441_v34, %s2897_s6  ;;  %1712 = vrot.lane.b32.xlu0 %v3441_v34, %s2890_s3 }
 0x169   :  { %1914 = vrot.lane.b32.xlu0 %v3441_v34, %s2892_s27  ;;  %1817 = vrot.lane.b32.xlu1 %v3443_v6, %s2891_s26 }
 0x16a   :  { %v3497_v27 = vpop.f32.mrb[4].mxu0 }
 0x16b   :  { %5077 = vst [vmem:[#allocation38_spill] sm:$0xff] %v3497_v27  ;;  %v3499_v47 = vpop.f32.mrb[5].mxu0 }
 0x16c   :  { %5078 = vst [vmem:[#allocation39_spill] sm:$0xff] %v3499_v47 }
 0x16d   :  { %2116 = vrot.lane.b32.xlu0 %v3441_v34, %s2894_s29  ;;  %2019 = vrot.lane.b32.xlu1 %v3443_v6, %s2893_s28 }
 0x171   :  { %2221 = vrot.lane.b32.xlu1 %v3443_v6, %s2895_s30  ;;  %1716 = vrot.lane.b32.xlu0 %v3443_v6, %s2890_s3 }
 0x175   :  { %2322 = vrot.lane.b32.xlu1 %v3443_v6, %s2896_s5  ;;  %1918 = vrot.lane.b32.xlu0 %v3443_v6, %s2892_s27 }
 0x179   :  { %2423 = vrot.lane.b32.xlu1 %v3443_v6, %s2897_s6  ;;  %2120 = vrot.lane.b32.xlu0 %v3443_v6, %s2894_s29 }
 0x17d   :  { %1819 = vrot.lane.b32.xlu0 %v3461_v42, %s2891_s26  ;;  %1823 = vrot.lane.b32.xlu1 %v3467_v43, %s2891_s26 }
 0x181   :  { %1718 = vrot.lane.b32.xlu0 %v3461_v42, %s2890_s3  ;;  %1821 = vrot.lane.b32.xlu1 %v3469_v44, %s2891_s26 }
 0x185   :  { %2021 = vrot.lane.b32.xlu0 %v3461_v42, %s2893_s28  ;;  %1720 = vrot.lane.b32.xlu1 %v3469_v44, %s2890_s3 }
 0x189   :  { %1920 = vrot.lane.b32.xlu0 %v3461_v42, %s2892_s27  ;;  %2023 = vrot.lane.b32.xlu1 %v3469_v44, %s2893_s28 }
 0x18d   :  { %2223 = vrot.lane.b32.xlu0 %v3461_v42, %s2895_s30  ;;  %1922 = vrot.lane.b32.xlu1 %v3469_v44, %s2892_s27 }
 0x191   :  { %2122 = vrot.lane.b32.xlu0 %v3461_v42, %s2894_s29  ;;  %2225 = vrot.lane.b32.xlu1 %v3469_v44, %s2895_s30 }
 0x195   :  { %2425 = vrot.lane.b32.xlu0 %v3461_v42, %s2897_s6  ;;  %2124 = vrot.lane.b32.xlu1 %v3469_v44, %s2894_s29 }
 0x199   :  { %2324 = vrot.lane.b32.xlu0 %v3461_v42, %s2896_s5  ;;  %2427 = vrot.lane.b32.xlu1 %v3469_v44, %s2897_s6 }
 0x19d   :  { %1722 = vrot.lane.b32.xlu0 %v3467_v43, %s2890_s3  ;;  %2326 = vrot.lane.b32.xlu1 %v3469_v44, %s2896_s5 }
 0x1a1   :  { %1924 = vrot.lane.b32.xlu0 %v3467_v43, %s2892_s27  ;;  %1724 = vrot.lane.b32.xlu1 %v3475_v24, %s2890_s3 }
 0x1a5   :  { %2025 = vrot.lane.b32.xlu0 %v3467_v43, %s2893_s28  ;;  %1926 = vrot.lane.b32.xlu1 %v3475_v24, %s2892_s27 }
 0x1a9   :  { %2126 = vrot.lane.b32.xlu0 %v3467_v43, %s2894_s29  ;;  %2027 = vrot.lane.b32.xlu1 %v3475_v24, %s2893_s28 }
 0x1ad   :  { %2227 = vrot.lane.b32.xlu0 %v3467_v43, %s2895_s30  ;;  %2128 = vrot.lane.b32.xlu1 %v3475_v24, %s2894_s29 }
 0x1af   :  { %v3573_v51 = vpop.permute.xlu0 %1811  ;;  %v3575_v29 = vpop.permute.xlu1 %1710 }
 0x1b0   :  { %5081 = vst [vmem:[#allocation42_spill] sm:$0xff] %v3573_v51  ;;  %5082 = vst [vmem:[#allocation43_spill] sm:$0xff] %v3575_v29 }
 0x1b1   :  { %2328 = vrot.lane.b32.xlu0 %v3467_v43, %s2896_s5  ;;  %2229 = vrot.lane.b32.xlu1 %v3475_v24, %s2895_s30 }
 0x1b3   :  { %v3581_v36 = vpop.permute.xlu0 %2013  ;;  %v3583_v49 = vpop.permute.xlu1 %1912 }
 0x1b4   :  { %5083 = vst [vmem:[#allocation44_spill] sm:$0xff] %v3581_v36  ;;  %5084 = vst [vmem:[#allocation45_spill] sm:$0xff] %v3583_v49 }
 0x1b5   :  { %1825 = vrot.lane.b32.xlu0 %v3475_v24, %s2891_s26  ;;  %2031 = vrot.lane.b32.xlu1 %v3497_v27, %s2893_s28 }
 0x1b7   :  { %v3589_v34 = vpop.permute.xlu0 %2215  ;;  %v3591_v51 = vpop.permute.xlu1 %2114 }
 0x1b8   :  { %5085 = vst [vmem:[#allocation46_spill] sm:$0xff] %v3589_v34  ;;  %5086 = vst [vmem:[#allocation47_spill] sm:$0xff] %v3591_v51 }
 0x1b9   :  { %1728 = vrot.lane.b32.xlu0 %v3497_v27, %s2890_s3  ;;  %2334 = vrot.lane.b32.xlu1 %v3497_v27, %s2896_s5 }
 0x1bb   :  { %v3597_v46 = vpop.permute.xlu0 %2316  ;;  %v3599_v36 = vpop.permute.xlu1 %1714 }
 0x1bc   :  { %5087 = vst [vmem:[#allocation48_spill] sm:$0xff] %v3597_v46 }
 0x1bd   :  { %1930 = vrot.lane.b32.xlu0 %v3497_v27, %s2892_s27  ;;  %2233 = vrot.lane.b32.xlu1 %v3497_v27, %s2895_s30 }
 0x1bf   :  { %v3605_v18 = vpop.permute.xlu0 %2417  ;;  %v3607_v34 = vpop.permute.xlu1 %1916 }
 0x1c0   :  { %5088 = vst [vmem:[#allocation49_spill] sm:$0xff] %v3605_v18 }
 0x1c1   :  { %1829 = vrot.lane.b32.xlu0 %v3497_v27, %s2891_s26  ;;  %1726 = vrot.lane.b32.xlu1 %v3499_v47, %s2890_s3 }
 0x1c3   :  { %v3613_v16 = vpop.permute.xlu0 %1815  ;;  %v3615_v1 = vpop.permute.xlu1 %2118 }
 0x1c5   :  { %2132 = vrot.lane.b32.xlu0 %v3497_v27, %s2894_s29  ;;  %1928 = vrot.lane.b32.xlu1 %v3499_v47, %s2892_s27 }
 0x1c7   :  { %v3623_v48 = vpop.permute.xlu0 %2017  ;;  %v3625_v19 = vpop.permute.xlu1 %1813 }
 0x1c8   :  { %5089 = vst [vmem:[#allocation50_spill] sm:$0xff] %v3625_v19  ;;  %v2447_v19 = vsel %vm2412_vm7, 1, %v4974_v37 }
 0x1c9   :  { %2429 = vrot.lane.b32.xlu0 %v3467_v43, %s2897_s6  ;;  %1827 = vrot.lane.b32.xlu1 %v3499_v47, %s2891_s26  ;;  %v2455_v37 = vrot.slane %v2447_v19, %v3094_v9 }
 0x1cb   :  { %v3634_v38 = vpop.permute.xlu0 %2219  ;;  %v3636_v40 = vpop.permute.xlu1 %2015  ;;  %vm3670_vm9 = vcmp.eq.s32.totalorder %v2455_v37, 1 }
 0x1cc   :  { %5090 = vst [vmem:[#allocation51_spill] sm:$0xff] %v3636_v40  ;;  %v5098_v5 = vsel %vm3670_vm9, 4294967295, %v5097_v5 }
 0x1cd   :  { %2029 = vrot.lane.b32.xlu0 %v3499_v47, %s2893_s28  ;;  %2130 = vrot.lane.b32.xlu1 %v3499_v47, %s2894_s29  ;;  %5099 = vst [vmem:[#allocation56_spill] sm:$0xff] %v5098_v5 }
 0x1cf   :  { %v3644_v32 = vpop.permute.xlu0 %2320  ;;  %v3646_v22 = vpop.permute.xlu1 %2217 }
 0x1d0   :  { %5091 = vst [vmem:[#allocation52_spill] sm:$0xff] %v3644_v32  ;;  %5092 = vst [vmem:[#allocation53_spill] sm:$0xff] %v3646_v22  ;;  %v3656_v15 = vsel %vm5006_vm2, %v3597_v46, %v3644_v32 }
 0x1d1   :  { %2332 = vrot.lane.b32.xlu0 %v3499_v47, %s2896_s5  ;;  %2330 = vrot.lane.b32.xlu1 %v3475_v24, %s2896_s5 }
 0x1d3   :  { %v3666_v13 = vpop.permute.xlu0 %2421  ;;  %v3668_v22 = vpop.permute.xlu1 %2318 }
 0x1d4   :  { %5095 = vst [vmem:[#allocation54_spill] sm:$0xff] %v3666_v13  ;;  %5096 = vst [vmem:[#allocation55_spill] sm:$0xff] %v3668_v22  ;;  %v3678_v19 = vsel %vm5007_vm4, %v3605_v18, %v3666_v13 }
 0x1d5   :  { %5100 = vst [vmem:[#allocation57_spill] sm:$0xff] %v3678_v19  ;;  %2231 = vrot.lane.b32.xlu0 %v3499_v47, %s2895_s30  ;;  %2431 = vrot.lane.b32.xlu1 %v3475_v24, %s2897_s6  ;;  %v1703_v19 = vsel %vm5026_vm10, %v3313_v23, %v3317_v31 }
 0x1d6   :  { %vm1706_vm13 = vcmp.eq.f32.partialorder %v1703_v19, %v3132_v14  ;;  %v5105_v19 = vmov 0  }
 0x1d7   :  { %v3687_v37 = vpop.permute.xlu1 %2419  ;;  %v3689_v46 = vpop.permute.xlu0 %1712  ;;  %v1741_v7 = vsel %vm1706_vm13, 1, %v5105_v19 }
 0x1d8   :  { %5101 = vst [vmem:[#allocation58_spill] sm:$0xff] %v3687_v37  ;;  %5102 = vst [vmem:[#allocation59_spill] sm:$0xff] %v3689_v46  ;;  %v1752_v32 = vrot.slane %v1741_v7, %v3094_v9  ;;  %v1943_v7 = vsel %vm1908_vm0, 1, %v5105_v19 }
 0x1d9   :  { %2433 = vrot.lane.b32.xlu0 %v3499_v47, %s2897_s6  ;;  %2435 = vrot.lane.b32.xlu1 %v3497_v27, %s2897_s6  ;;  %v1702_v47 = vsel %vm5026_vm10, %v3317_v31, %v3311_v0  ;;  %v1803_v27 = vsel %vm5012_vm11, %v3319_v33, %v3329_v54  ;;  %v1802_v31 = vsel %vm5012_vm11, %v3329_v54, %v3341_v60 }
 0x1da   :  { %vm1707_vm14 = vcmp.eq.f32.partialorder %v1702_v47, %v3105_v12  ;;  %vm1807_vm15 = vcmp.eq.f32.partialorder %v1803_v27, %v3132_v14  ;;  %vm1808_vm6 = vcmp.eq.f32.partialorder %v1802_v31, %v3105_v12  ;;  %v2005_v54 = vsel %vm5013_vm1, %v3337_v58, %v3335_v57 }
 0x1db   :  { %v3696_v18 = vpop.permute.xlu0 %1914  ;;  %v3698_v40 = vpop.permute.xlu1 %1817  ;;  %v1742_v47 = vsel %vm1707_vm14, 1, %v5105_v19  ;;  %v1842_v27 = vsel %vm1807_vm15, 1, %v5105_v19  ;;  %v1736_v60 = vsel %vm5026_vm10, %v3575_v29, %v3599_v36  ;;  %v1843_v57 = vsel %vm1808_vm6, 1, %v5105_v19 }
 0x1dc   :  { %5103 = vst [vmem:[#allocation60_spill] sm:$0xff] %v3696_v18  ;;  %v1756_v58 = vrot.slane %v1742_v47, %v3094_v9  ;;  %vm2009_vm7 = vcmp.eq.f32.partialorder %v2005_v54, %v3132_v14  ;;  %vm3764_vm13 = vcmp.eq.s32.totalorder %v1752_v32, 1  ;;  %v1853_v31 = vrot.slane %v1842_v27, %v3094_v9 }
 0x1dd   :  { %v1904_v29 = vsel %vm5014_vm12, %v3333_v56, %v3347_v63  ;;  %v2107_v47 = vsel %vm5025_vm3, %v3345_v62, %v3343_v61  ;;  %v1954_v32 = vrot.slane %v1943_v7, %v3094_v9  ;;  %v1771_v27 = vsel %vm3764_vm13, %v1736_v60, 0.0 }
 0x1de   :  { %v1857_v7 = vrot.slane %v1843_v57, %v3094_v9  ;;  %vm3798_vm14 = vcmp.eq.s32.totalorder %v1756_v58, 1  ;;  %vm1909_vm15 = vcmp.eq.f32.partialorder %v1904_v29, %v3105_v12  ;;  %vm2110_vm0 = vcmp.eq.f32.partialorder %v2107_v47, %v3132_v14 }
 0x1df   :  { %v3705_v24 = vpop.permute.xlu0 %2116  ;;  %v3707_v43 = vpop.permute.xlu1 %2019  ;;  %v2207_v60 = vsel %vm5027_vm5, %v3357_v10, %v3355_v8  ;;  %vm3809_vm6 = vcmp.eq.s32.totalorder %v1853_v31, 1  ;;  %v1781_v62 = vadd.f32 %v3435_v50, %v1771_v27 }
 0x1e0   :  { %5104 = vst [vmem:[#allocation61_spill] sm:$0xff] %v3705_v24 }
 0x1e3   :  { %v3723_v3 = vpop.permute.xlu1 %2221  ;;  %v3725_v11 = vpop.permute.xlu0 %1716 }
 0x1e4   :  { %v1737_v56 = vsel %vm5026_vm10, %v3689_v46, %v3725_v11 }
 0x1e5   :  { %v1776_v47 = vsel %vm3764_vm13, %v1737_v56, 0.0 }
 0x1e7   :  { %v3737_v28 = vpop.permute.xlu1 %2322  ;;  %v3739_v55 = vpop.permute.xlu0 %1918 }
 0x1e8   :  { %5106 = vst [vmem:[#allocation62_spill] sm:$0xff] %v3737_v28  ;;  %v3750_v4 = vsel %vm5006_vm2, %v3668_v22, %v3737_v28  ;;  %vm3831_vm2 = vcmp.eq.s32.totalorder %v1857_v7, 1  ;;  %v2145_v22 = vsel %vm2110_vm0, 1, %v5105_v19 }
 0x1eb   :  { %v3768_v28 = vpop.permute.xlu1 %2423  ;;  %v3770_v13 = vpop.permute.xlu0 %2120 }
 0x1ec   :  { %v3786_v54 = vsel %vm5007_vm4, %v3687_v37, %v3768_v28  ;;  %v2044_v37 = vsel %vm2009_vm7, 1, %v5105_v19  ;;  %vm3825_vm7 = vcmp.eq.s32.totalorder %v1954_v32, 1  ;;  %vm2211_vm4 = vcmp.eq.f32.partialorder %v2207_v60, %v3132_v14 }
 0x1ed   :  { %5109 = vst [vmem:[#allocation63_spill] sm:$0xff] %v3786_v54  ;;  %v1938_v54 = vsel %vm5014_vm12, %v3583_v49, %v3607_v34  ;;  %v2055_v27 = vrot.slane %v2044_v37, %v3094_v9  ;;  %v1944_v32 = vsel %vm1909_vm15, 1, %v5105_v19  ;;  %v1786_v49 = vadd.f32 %v3443_v6, %v1776_v47 }
 0x1ee   :  { %v1973_v7 = vsel %vm3825_vm7, %v1938_v54, 0.0  ;;  %v1939_v37 = vsel %vm5014_vm12, %v3696_v18, %v3739_v55  ;;  %v1701_v60 = vsel %vm5026_vm10, %v3311_v0, %v3315_v26 }
 0x1ef   :  { %v1820_v57 = vpop.permute.xlu0 %1819  ;;  %v3813_v58 = vpop.permute.xlu1 %1823  ;;  %vm3871_vm13 = vcmp.eq.s32.totalorder %v2055_v27, 1  ;;  %v1978_v5 = vsel %vm3825_vm7, %v1939_v37, 0.0  ;;  %vm1708_vm0 = vcmp.eq.f32.partialorder %v1701_v60, %v3129_v2  ;;  %v5164_v60 = vld [vmem:[#allocation36_spill] sm:$0xff] }
 0x1f0   :  { %5114 = vst [vmem:[#allocation64_spill] sm:$0xff] %v3813_v58  ;;  %v1835_v8 = vsel %vm5012_vm11, %v3613_v16, %v1820_v57  ;;  %v1833_v29 = vsel %vm5012_vm11, %v1820_v57, %v3813_v58  ;;  %v1958_v57 = vrot.slane %v1944_v32, %v3094_v9 }
 0x1f1   :  { %v1872_v46 = vsel %vm3809_vm6, %v1835_v8, 0.0  ;;  %v2106_v8 = vsel %vm5025_vm3, %v3343_v61, %v3374_v35  ;;  %v1873_v27 = vsel %vm3831_vm2, %v1833_v29, 0.0 }
 0x1f2   :  { %v1882_v56 = vadd.f32 %v1872_v46, %v1781_v62  ;;  %vm2111_vm15 = vcmp.eq.f32.partialorder %v2106_v8, %v3105_v12 }
 0x1f3   :  { %v3852_v62 = vpop.permute.xlu0 %1718  ;;  %v3854_v46 = vpop.permute.xlu1 %1821 }
 0x1f4   :  { %5119 = vst [vmem:[#allocation65_spill] sm:$0xff] %v3854_v46  ;;  %v1734_v61 = vsel %vm5026_vm10, %v3599_v36, %v3852_v62  ;;  %v1836_v35 = vsel %vm5012_vm11, %v3698_v40, %v3854_v46  ;;  %v1983_v6 = vadd.f32 %v1973_v7, %v1882_v56  ;;  %v2156_v36 = vrot.slane %v2145_v22, %v3094_v9 }
 0x1f5   :  { %v1772_v54 = vsel %vm3798_vm14, %v1734_v61, 0.0  ;;  %v1877_v47 = vsel %vm3809_vm6, %v1836_v35, 0.0  ;;  %v2140_v56 = vsel %vm5025_vm3, %v3591_v51, %v3615_v1  ;;  %vm2413_vm6 = vcmp.eq.f32.partialorder %v3403_v20, %v3132_v14  ;;  %v5168_v51 = vld [vmem:[#allocation23_spill] sm:$0xff] }
 0x1f6   :  { %v1782_v58 = vadd.f32 %v1772_v54, %v3461_v42  ;;  %v1887_v46 = vadd.f32 %v1877_v47, %v1786_v49  ;;  %v2246_v42 = vsel %vm2211_vm4, 1, %v5105_v19  ;;  %vm3910_vm4 = vcmp.eq.s32.totalorder %v2156_v36, 1 }
 0x1f7   :  { %v3887_v7 = vpop.permute.xlu0 %2021  ;;  %v3889_v32 = vpop.permute.xlu1 %1720  ;;  %v2175_v63 = vsel %vm3910_vm4, %v2140_v56, 0.0 }
 0x1f8   :  { %v2037_v49 = vsel %vm5013_vm1, %v3623_v48, %v3887_v7  ;;  %v1735_v31 = vsel %vm5026_vm10, %v3725_v11, %v3889_v32  ;;  %v1883_v22 = vadd.f32 %v1873_v27, %v1782_v58  ;;  %v1988_v37 = vadd.f32 %v1978_v5, %v1887_v46 }
 0x1f9   :  { %v2074_v29 = vsel %vm3871_vm13, %v2037_v49, 0.0  ;;  %v1777_v61 = vsel %vm3798_vm14, %v1735_v31, 0.0  ;;  %v2146_v58 = vsel %vm2111_vm15, 1, %v5105_v19  ;;  %vm3922_vm14 = vcmp.eq.s32.totalorder %v1958_v57, 1 }
 0x1fa   :  { %v2084_v54 = vadd.f32 %v2074_v29, %v1983_v6  ;;  %v3915_v11 = vadd.f32 %v1777_v61, %v3469_v44  ;;  %v2257_v6 = vrot.slane %v2246_v42, %v3094_v9  ;;  %v2141_v44 = vsel %vm5025_vm3, %v3705_v24, %v3770_v13  ;;  %v5177_v24 = vld [vmem:[#allocation29_spill] sm:$0xff] }
 0x1fb   :  { %v3926_v0 = vpop.permute.xlu0 %1920  ;;  %v3928_v47 = vpop.permute.xlu1 %2023  ;;  %v1700_v27 = vsel %vm5026_vm10, %v3315_v26, %v3321_v39  ;;  %v1704_v49 = vsel %vm5026_vm10, %v3321_v39, %v3313_v23  ;;  %v2180_v18 = vsel %vm3910_vm4, %v2141_v44, 0.0  ;;  %v2160_v14 = vrot.slane %v2146_v58, %v3094_v9 }
 0x1fc   :  { %v1936_v8 = vsel %vm5014_vm12, %v3607_v34, %v3926_v0  ;;  %v2038_v57 = vsel %vm5013_vm1, %v3707_v43, %v3928_v47  ;;  %v2185_v36 = vadd.f32 %v2175_v63, %v2084_v54  ;;  %vm3962_vm7 = vcmp.eq.s32.totalorder %v2257_v6, 1 }
 0x1fd   :  { %v1974_v56 = vsel %vm3922_vm14, %v1936_v8, 0.0  ;;  %v2079_v5 = vsel %vm3871_vm13, %v2038_v57, 0.0  ;;  %vm2313_vm13 = vcmp.eq.f32.partialorder %v3427_v45, %v3105_v12  ;;  %vm1705_vm15 = vcmp.eq.f32.partialorder %v1704_v49, %v3111_v30 }
 0x1fe   :  { %v3954_v34 = vadd.f32 %v1974_v56, %v1883_v22  ;;  %v2089_v42 = vadd.f32 %v2079_v5, %v1988_v37  ;;  %v2448_v22 = vsel %vm2413_vm6, 1, %v5105_v19  ;;  %vm1709_vm4 = vcmp.eq.f32.partialorder %v1700_v27, %v3156_v17 }
 0x1ff   :  { %v3966_v29 = vpop.permute.xlu0 %2223  ;;  %v3968_v26 = vpop.permute.xlu1 %1922  ;;  %v1804_v45 = vsel %vm5012_vm11, %v3325_v52, %v3319_v33  ;;  %v2348_v35 = vsel %vm2313_vm13, 1, %v5105_v19  ;;  %vm3997_vm6 = vcmp.eq.s32.totalorder %v2160_v14, 1  ;;  %v1743_v33 = vsel %vm1708_vm0, 1, %v5105_v19 }
 0x200   :  { %v2239_v23 = vsel %vm5027_vm5, %v3634_v38, %v3966_v29  ;;  %v3981_v39 = vsel %vm5014_vm12, %v3739_v55, %v3968_v26  ;;  %v2190_v20 = vadd.f32 %v2180_v18, %v2089_v42  ;;  %v1906_v55 = vsel %vm5014_vm12, %v3327_v53, %v3323_v41 }
 0x201   :  { %v2276_v37 = vsel %vm3962_vm7, %v2239_v23, 0.0  ;;  %v5130_v44 = vsel %vm3648_vm8, %v3656_v15, 0.0  ;;  %v2459_v57 = vrot.slane %v2448_v22, %v3094_v9  ;;  %vm1806_vm0 = vcmp.eq.f32.partialorder %v1804_v45, %v3111_v30  ;;  %v5134_v23 = vld [vmem:[#allocation54_spill] sm:$0xff]  ;;  %v5143_v45 = vld [vmem:[#allocation13_spill] sm:$0xff] }
 0x202   :  { %v2286_v61 = vadd.f32 %v2276_v37, %v2185_v36  ;;  %v1760_v56 = vrot.slane %v1743_v33, %v3094_v9  ;;  %v4033_v5 = vsel %vm1705_vm15, 1, %v5105_v19  ;;  %vm1907_vm13 = vcmp.eq.f32.partialorder %v1906_v55, %v3111_v30 }
 0x203   :  { %v4001_v58 = vpop.permute.xlu0 %2122  ;;  %v4003_v63 = vpop.permute.xlu1 %2225  ;;  %v1805_v15 = vsel %vm5012_vm11, %v3339_v59, %v3325_v52  ;;  %v2362_v31 = vrot.slane %v2348_v35, %v3094_v9  ;;  %v4048_v14 = vsel %vm1709_vm4, 1, %v5105_v19  ;;  %vm5135_vm15 = vcmp.lt.s32.totalorder %v3362_v25, 124  ;;  %v5162_v35 = vld [vmem:[#allocation16_spill] sm:$0xff] }
 0x204   :  { %v4012_v6 = vsel %vm5025_vm3, %v3615_v1, %v4001_v58  ;;  %v2240_v41 = vsel %vm5027_vm5, %v3723_v3, %v4003_v63  ;;  %v2387_v8 = vadd.f32 %v5130_v44, %v2286_v61  ;;  %v5137_v27 = vsel %vm3648_vm8, %v3750_v4, 0.0  ;;  %v5141_v44 = vld [vmem:[#allocation12_spill] sm:$0xff] }
 0x205   :  { %v2281_v1 = vsel %vm3962_vm7, %v2240_v41, 0.0  ;;  %vm4050_vm7 = vcmp.eq.s32.totalorder %v2459_v57, 1  ;;  %vm4082_vm4 = vcmp.eq.s32.totalorder %v1760_v56, 1  ;;  %vm1810_vm8 = vcmp.eq.f32.partialorder %v1805_v15, %v3156_v17  ;;  %v5140_v41 = vld [vmem:[#allocation14_spill] sm:$0xff]  ;;  %v5161_v15 = vld [vmem:[#allocation28_spill] sm:$0xff] }
 0x206   :  { %v2291_v36 = vadd.f32 %v2281_v1, %v2190_v20  ;;  %v2006_v57 = vsel %vm5013_vm1, %v5141_v44, %v5140_v41  ;;  %v5142_v1 = vld [vmem:[#allocation22_spill] sm:$0xff]  ;;  %v5150_v41 = vld [vmem:[#allocation52_spill] sm:$0xff] }
 0x207   :  { %v4040_v42 = vpop.permute.xlu0 %2425  ;;  %v4042_v18 = vpop.permute.xlu1 %2124 }
 0x208   :  { %5131 = vst [vmem:[#allocation66_spill] sm:$0xff] %v4040_v42  ;;  %v2441_v52 = vsel %vm5135_vm15, %v5134_v23, %v4040_v42  ;;  %v4062_v20 = vsel %vm5025_vm3, %v3770_v13, %v4042_v18  ;;  %v2392_v22 = vadd.f32 %v5137_v27, %v2291_v36  ;;  %v4078_v13 = vsel %vm1806_vm0, 1, %v5105_v19 }
 0x209   :  { %5136 = vst [vmem:[#allocation54_spill] sm:$0xff] %v4062_v20  ;;  %v2478_v37 = vsel %vm4050_vm7, %v2441_v52, 0.0  ;;  %v4104_v23 = vsel %vm1907_vm13, 1, %v5105_v19  ;;  %v5146_v52 = vld [vmem:[#allocation15_spill] sm:$0xff]  ;;  %vm4110_vm0 = vcmp.eq.s32.totalorder %v2362_v31, 1  ;;  %vm5151_vm15 = vcmp.lt.s32.totalorder %v3362_v25, 4 }
 0x20a   :  { %v4080_v33 = vadd.f32 %v2478_v37, %v2387_v8  ;;  %v2004_v8 = vsel %vm5013_vm1, %v5143_v45, %v5142_v1  ;;  %v1801_v27 = vsel %vm5012_vm11, %v5146_v52, %v3339_v59  ;;  %v5147_v37 = vmov 0  ;;  %v5153_v45 = vld [vmem:[#allocation20_spill] sm:$0xff]  ;;  %v5154_v31 = vld [vmem:[#allocation21_spill] sm:$0xff] }
 0x20b   :  { %v4097_v36 = vpop.permute.xlu0 %2324  ;;  %v4099_v56 = vpop.permute.xlu1 %2427  ;;  %v5148_v37 = vsel %vm4110_vm0, 4294967295, %v5147_v37  ;;  %vm5152_vm13 = vcmp.lt.s32.totalorder %v3362_v25, 124  ;;  %v1902_v59 = vsel %vm5014_vm12, %v5153_v45, %v3327_v53  ;;  %v2007_v52 = vsel %vm5013_vm1, %v5154_v31, %v5141_v44  ;;  %v5155_v44 = vld [vmem:[#allocation17_spill] sm:$0xff] }
 0x20c   :  { %5144 = vst [vmem:[#allocation14_spill] sm:$0xff] %v4097_v36  ;;  %5145 = vst [vmem:[#allocation12_spill] sm:$0xff] %v4099_v56  ;;  %v4118_v1 = vsel %vm5151_vm15, %v5150_v41, %v4097_v36  ;;  %v2442_v55 = vsel %vm5152_vm13, %v3768_v28, %v4099_v56  ;;  %vm2008_vm15 = vcmp.eq.f32.partialorder %v2006_v57, %v3111_v30  ;;  %v5185_v36 = vld [vmem:[#allocation27_spill] sm:$0xff] }
 0x20d   :  { %5149 = vst [vmem:[#allocation22_spill] sm:$0xff] %v5148_v37  ;;  %v2483_v61 = vsel %vm4050_vm7, %v2442_v55, 0.0  ;;  %vm2010_vm13 = vcmp.eq.f32.partialorder %v2004_v8, %v3105_v12  ;;  %vm1809_vm11 = vcmp.eq.f32.partialorder %v1801_v27, %v3129_v2  ;;  %v1903_v31 = vsel %vm5014_vm12, %v5155_v44, %v5153_v45  ;;  %v5167_v27 = vld [vmem:[#allocation31_spill] sm:$0xff] }
 0x20e   :  { %v4141_v53 = vadd.f32 %v2483_v61, %v2392_v22  ;;  %v4157_v8 = vsel %vm1810_vm8, 1, %v5105_v19  ;;  %vm1911_vm7 = vcmp.eq.f32.partialorder %v1902_v59, %v3156_v17  ;;  %vm2012_vm1 = vcmp.eq.f32.partialorder %v2007_v52, %v3156_v17  ;;  %v5158_v61 = vld [vmem:[#allocation62_spill] sm:$0xff] }
 0x20f   :  { %v4148_v4 = vpop.permute.xlu0 %1722  ;;  %v4150_v49 = vpop.permute.xlu1 %2326  ;;  %vm5159_vm12 = vcmp.lt.s32.totalorder %v3362_v25, 4  ;;  %v2045_v44 = vsel %vm2010_vm13, 1, %v5105_v19  ;;  %vm2112_vm8 = vcmp.eq.f32.partialorder %v5161_v15, %v3129_v2  ;;  %v5166_v15 = vld [vmem:[#allocation19_spill] sm:$0xff]  ;;  %v4205_v57 = vsel %vm1911_vm7, 1, %v5105_v19 }
 0x210   :  { %5156 = vst [vmem:[#allocation13_spill] sm:$0xff] %v4148_v4  ;;  %5157 = vst [vmem:[#allocation15_spill] sm:$0xff] %v4150_v49  ;;  %v1732_v22 = vsel %vm5026_vm10, %v3852_v62, %v4148_v4  ;;  %v4169_v45 = vsel %vm5159_vm12, %v5158_v61, %v4150_v49  ;;  %v5163_v62 = vld [vmem:[#allocation18_spill] sm:$0xff]  ;;  %v4186_v61 = vsel %vm2008_vm15, 1, %v5105_v19  ;;  %vm1910_vm12 = vcmp.eq.f32.partialorder %v1903_v31, %v3129_v2 }
 0x211   :  { %5160 = vst [vmem:[#allocation52_spill] sm:$0xff] %v4169_v45  ;;  %v1773_v55 = vsel %vm4082_vm4, %v1732_v22, 0.0  ;;  %v2108_v28 = vsel %vm5025_vm3, %v5163_v62, %v5162_v35  ;;  %v2208_v41 = vsel %vm5027_vm5, %v5166_v15, %v3357_v10  ;;  %v4215_v31 = vsel %vm2012_vm1, 1, %v5105_v19 }
 0x212   :  { %v4189_v56 = vadd.f32 %v1773_v55, %v5164_v60  ;;  %v4210_v60 = vsel %vm1809_vm11, 1, %v5105_v19  ;;  %v2147_v10 = vsel %vm2112_vm8, 1, %v5105_v19  ;;  %v2059_v59 = vrot.slane %v2045_v44, %v3094_v9 }
 0x213   :  { %v4198_v49 = vpop.permute.xlu0 %1924  ;;  %v4200_v35 = vpop.permute.xlu1 %1724  ;;  %vm2109_vm15 = vcmp.eq.f32.partialorder %v2108_v28, %v3111_v30  ;;  %vm2212_vm11 = vcmp.eq.f32.partialorder %v5167_v27, %v3105_v12  ;;  %v2051_v22 = vrot.slane %v4186_v61, %v3094_v9  ;;  %vm2011_vm1 = vcmp.eq.f32.partialorder %v5168_v51, %v3129_v2  ;;  %v5179_v28 = vld [vmem:[#allocation40_spill] sm:$0xff] }
 0x214   :  { %5165 = vst [vmem:[#allocation20_spill] sm:$0xff] %v4189_v56  ;;  %v1733_v55 = vsel %vm5026_vm10, %v3889_v32, %v4200_v35  ;;  %v4233_v56 = vsel %vm1910_vm12, 1, %v5105_v19  ;;  %v5169_v32 = vld [vmem:[#allocation37_spill] sm:$0xff]  ;;  %vm2210_vm13 = vcmp.eq.f32.partialorder %v2208_v41, %v3111_v30  ;;  %v2164_v21 = vrot.slane %v2147_v10, %v3094_v9 }
 0x215   :  { %v1778_v52 = vsel %vm4082_vm4, %v1733_v55, 0.0  ;;  %v2247_v44 = vsel %vm2212_vm11, 1, %v5105_v19  ;;  %vm4255_vm4 = vcmp.eq.s32.totalorder %v2059_v59, 1  ;;  %vm5175_vm7 = vcmp.lt.s32.totalorder %v3362_v25, 126 }
 0x216   :  { %v4236_v42 = vadd.f32 %v1778_v52, %v5169_v32  ;;  %v5172_v52 = vld [vmem:[#allocation26_spill] sm:$0xff]  ;;  %v4264_v51 = vsel %vm2011_vm1, 1, %v5105_v19  ;;  %v4273_v59 = vsel %vm2109_vm15, 1, %v5105_v19  ;;  %v2245_v55 = vsel %vm2210_vm13, 1, %v5105_v19  ;;  %vm5188_vm13 = vmmov %vm5175_vm7 }
 0x217   :  { %v4241_v27 = vpop.permute.xlu0 %2025  ;;  %v4243_v61 = vpop.permute.xlu1 %1926  ;;  %v2104_v32 = vsel %vm5025_vm3, %v5172_v52, %v5163_v62  ;;  %v5176_v52 = vld [vmem:[#allocation25_spill] sm:$0xff]  ;;  %vm5180_vm15 = vcmp.lt.s32.totalorder %v3362_v25, 124  ;;  %vm4290_vm11 = vcmp.eq.s32.totalorder %v2164_v21, 1  ;;  %v5181_v4 = vmov 0 }
 0x218   :  { %5170 = vst [vmem:[#allocation21_spill] sm:$0xff] %v4236_v42  ;;  %5171 = vst [vmem:[#allocation17_spill] sm:$0xff] %v4241_v27  ;;  %v2035_v10 = vsel %vm5175_vm7, %v3887_v7, %v4241_v27  ;;  %vm2311_vm8 = vcmp.eq.f32.partialorder %v5176_v52, %v3111_v30  ;;  %v2209_v7 = vsel %vm5027_vm5, %v5177_v24, %v5166_v15  ;;  %v5182_v4 = vsel %vm4290_vm11, 4294967295, %v5181_v4  ;;  %v5184_v15 = vld [vmem:[#allocation41_spill] sm:$0xff] }
 0x219   :  { %v2075_v62 = vsel %vm4255_vm4, %v2035_v10, 0.0  ;;  %vm2113_vm12 = vcmp.eq.f32.partialorder %v2104_v32, %v3156_v17  ;;  %v5178_v10 = vld [vmem:[#allocation24_spill] sm:$0xff]  ;;  %v2261_v41 = vrot.slane %v2247_v44, %v3094_v9  ;;  %vm5186_vm1 = vmmov %vm5180_vm15  ;;  %v5189_v44 = vsel %vm3997_vm6, %v4012_v6, 0.0 }
 0x21a   :  { %v2085_v27 = vadd.f32 %v2075_v62, %v3954_v34  ;;  %v2411_v42 = vsel %vm5180_vm15, %v5179_v28, %v5178_v10  ;;  %v2408_v34 = vsel %vm5186_vm1, %v5185_v36, %v5184_v15  ;;  %vm2214_vm7 = vcmp.eq.f32.partialorder %v2209_v7, %v3156_v17 }
 0x21b   :  { %v4294_v20 = vpop.permute.xlu0 %2126  ;;  %v4296_v24 = vpop.permute.xlu1 %2027  ;;  %v2253_v36 = vrot.slane %v2245_v55, %v3094_v9  ;;  %v4332_v6 = vsel %vm2113_vm12, 1, %v5105_v19  ;;  %vm2416_vm1 = vcmp.eq.f32.partialorder %v2411_v42, %v3156_v17  ;;  %v5194_v55 = vrot.slane %v4078_v13, %v3094_v9 }
 0x21c   :  { %5183 = vst [vmem:[#allocation62_spill] sm:$0xff] %v4294_v20  ;;  %v4307_v32 = vsel %vm5025_vm3, %v4001_v58, %v4294_v20  ;;  %v4313_v21 = vsel %vm5188_vm13, %v3928_v47, %v4296_v24  ;;  %v2186_v62 = vadd.f32 %v5189_v44, %v2085_v27  ;;  %v2346_v47 = vsel %vm2311_vm8, 1, %v5105_v19  ;;  %v5190_v27 = vld [vmem:[#allocation32_spill] sm:$0xff]  ;;  %v5193_v58 = vld [vmem:[#allocation30_spill] sm:$0xff]  ;;  %v5226_v20 = vld [vmem:[#allocation51_spill] sm:$0xff] }
 0x21d   :  { %5187 = vst [vmem:[#allocation28_spill] sm:$0xff] %v4307_v32  ;;  %vm2315_vm15 = vcmp.eq.f32.partialorder %v5190_v27, %v3156_v17  ;;  %vm5191_vm13 = vcmp.lt.s32.totalorder %v3362_v25, 124  ;;  %v2063_v44 = vrot.slane %v4264_v51, %v3094_v9  ;;  %v4351_v27 = vsel %vm2214_vm7, 1, %v5105_v19 }
 0x21e   :  { %v2407_v7 = vsel %vm5191_vm13, %v5184_v15, %v5179_v28  ;;  %vm2213_vm8 = vcmp.eq.f32.partialorder %v5193_v58, %v3129_v2  ;;  %vm4358_vm12 = vcmp.eq.s32.totalorder %v5194_v55, 1  ;;  %v5195_v28 = vmov 0  ;;  %v5201_v58 = vld [vmem:[#allocation33_spill] sm:$0xff] }
 0x21f   :  { %v4344_v30 = vpop.permute.xlu0 %2227  ;;  %v4346_v52 = vpop.permute.xlu1 %2128  ;;  %v5196_v28 = vsel %vm4358_vm12, 4294967295, %v5195_v28  ;;  %vm4362_vm13 = vcmp.eq.s32.totalorder %v2051_v22, 1  ;;  %v5197_v15 = vmov 0  ;;  %vm4366_vm10 = vcmp.eq.s32.totalorder %v2261_v41, 1 }
 0x220   :  { %5192 = vst [vmem:[#allocation16_spill] sm:$0xff] %v4344_v30  ;;  %v5198_v15 = vsel %vm4362_vm13, 4294967295, %v5197_v15  ;;  %v5199_v10 = vmov 0  ;;  %v2237_v51 = vsel %vm5027_vm5, %v3966_v29, %v4344_v30  ;;  %vm2314_vm7 = vcmp.eq.f32.partialorder %v5201_v58, %v3129_v2 }
 0x221   :  { %v5200_v10 = vsel %vm4366_vm10, 4294967295, %v5199_v10  ;;  %v4377_v13 = vsel %vm2315_vm15, 1, %v5105_v19  ;;  %vm4379_vm3 = vcmp.eq.s32.totalorder %v2253_v36, 1  ;;  %v5203_v22 = vmov 0 }
 0x222   :  { %5202 = vst [vmem:[#allocation18_spill] sm:$0xff] %v4377_v13  ;;  %v5204_v22 = vsel %vm4379_vm3, 4294967295, %v5203_v22  ;;  %v2277_v41 = vsel %vm4366_vm10, %v2237_v51, 0.0  ;;  %v4390_v29 = vsel %vm2416_vm1, 1, %v5105_v19  ;;  %vm2415_vm5 = vcmp.eq.f32.partialorder %v2407_v7, %v3129_v2 }
 0x223   :  { %5205 = vst [vmem:[#allocation36_spill] sm:$0xff] %v4390_v29  ;;  %vm5206_vm15 = vcmp.eq.f32.partialorder %v2408_v34, %v3105_v12  ;;  %v2287_v58 = vadd.f32 %v2277_v41, %v2186_v62  ;;  %v4399_v30 = vsel %vm2213_vm8, 1, %v5105_v19  ;;  %v4402_v51 = vmul.f32 0.012345679, %v4080_v33  ;;  %v4404_v55 = vpop.permute.xlu0 %2328  ;;  %v4406_v32 = vpop.permute.xlu1 %2229  ;;  %v5225_v29 = vld [vmem:[#allocation50_spill] sm:$0xff] }
 0x224   :  { %v4396_v36 = vsel %vm5206_vm15, 1, %v5105_v19  ;;  %v2354_v17 = vrot.slane %v2346_v47, %v3094_v9  ;;  %v2269_v2 = vrot.slane %v4351_v27, %v3094_v9  ;;  %v4412_v12 = vsel %vm2314_vm7, 1, %v5105_v19  ;;  %v5220_v27 = vld [vmem:[#allocation46_spill] sm:$0xff] }
 0x225   :  { %5207 = vst [vmem:[#allocation19_spill] sm:$0xff] %v4402_v51  ;;  %vm5208_vm1 = vcmp.lt.s32.totalorder %v3362_v25, 125  ;;  %v5210_v34 = vrot.slane %v4033_v5, %v3094_v9  ;;  %v5211_v62 = vmov 0  ;;  %v5213_v47 = vsel %vm4110_vm0, %v4118_v1, 0.0  ;;  %v5216_v1 = vld [vmem:[#allocation42_spill] sm:$0xff] }
 0x226   :  { %v4418_v42 = vsel %vm5208_vm1, %v4003_v63, %v4406_v32  ;;  %v4431_v7 = vadd.f32 %v5213_v47, %v2287_v58  ;;  %v4436_v41 = vsel %vm2415_vm5, 1, %v5105_v19  ;;  %vm5217_vm7 = vcmp.lt.s32.totalorder %v3362_v25, 127  ;;  %v5218_v47 = vld [vmem:[#allocation44_spill] sm:$0xff]  ;;  %vm5221_vm15 = vmmov %vm5208_vm1 }
 0x227   :  { %5209 = vst [vmem:[#allocation31_spill] sm:$0xff] %v4418_v42  ;;  %vm4423_vm8 = vcmp.eq.s32.totalorder %v5210_v34, 1  ;;  %5215 = vst [vmem:[#allocation37_spill] sm:$0xff] %v4436_v41  ;;  %v4449_v58 = vsel %vm5217_vm7, %v5216_v1, %v3613_v16  ;;  %vm5219_vm5 = vcmp.lt.s32.totalorder %v3362_v25, 126  ;;  %v4461_v63 = vsel %vm5221_vm15, %v5220_v27, %v3634_v38  ;;  %v2032_v27 = vpop.permute.xlu1 %2031  ;;  %v5232_v1 = vld [vmem:[#allocation65_spill] sm:$0xff] }
 0x228   :  { %v5212_v62 = vsel %vm4423_vm8, 4294967295, %v5211_v62  ;;  %5214 = vst [vmem:[#allocation23_spill] sm:$0xff] %v4431_v7  ;;  %v4455_v19 = vsel %vm5219_vm5, %v5218_v47, %v3623_v48  ;;  %v5222_v34 = vrot.slane %v4233_v56, %v3094_v9  ;;  %v2265_v16 = vrot.slane %v4399_v30, %v3094_v9  ;;  %v5230_v7 = vld [vmem:[#allocation53_spill] sm:$0xff] }
 0x229   :  { %v1838_v48 = vsel %vm5217_vm7, %v5225_v29, %v3698_v40  ;;  %v4480_v38 = vsel %vm5219_vm5, %v5226_v20, %v3707_v43  ;;  %v4483_v56 = vmul.f32 0.012345679, %v4141_v53  ;;  %v5227_v30 = vrot.slane %v4048_v14, %v3094_v9 }
 0x22a   :  { %vm4466_vm1 = vcmp.eq.s32.totalorder %v5222_v34, 1  ;;  %v4485_v34 = vpop.permute.xlu0 %1825  ;;  %v2527_v40 = vmul.f32 2.0, %v4402_v51  ;;  %vm5231_vm7 = vcmp.lt.s32.totalorder %v3362_v25, 125  ;;  %vm5233_vm5 = vcmp.lt.s32.totalorder %v3362_v25, 127 }
 0x22b   :  { %vm4490_vm15 = vcmp.eq.s32.totalorder %v5227_v30, 1  ;;  %v4499_v43 = vsel %vm5231_vm7, %v5230_v7, %v3723_v3  ;;  %v1834_v14 = vsel %vm5233_vm5, %v5232_v1, %v4485_v34  ;;  %vm4507_vm9 = vcmp.eq.s32.totalorder %v2063_v44, 1  ;;  %v4556_v41 = vpop.permute.xlu1 %2334 }
 0x22c   :  { %v5236_v37 = vrot.slane %v4104_v23, %v3094_v9  ;;  %v2533_v3 = vmul.f32 %v4402_v51, %v4402_v51  ;;  %v1878_v1 = vsel %vm3831_vm2, %v1834_v14, 0.0  ;;  %v5239_v23 = vrot.slane %v4215_v31, %v3094_v9 }
 0x22d   :  { %vm4535_vm5 = vcmp.eq.s32.totalorder %v2354_v17, 1  ;;  %v5242_v51 = vmov 0  ;;  %v1876_v50 = vsel %vm4358_vm12, %v1838_v48, 0.0  ;;  %v1888_v14 = vadd.f32 %v1878_v1, %v3915_v11  ;;  %v5246_v17 = vld [vmem:[#allocation59_spill] sm:$0xff] }
 0x22e   :  { %vm4514_vm0 = vcmp.eq.s32.totalorder %v5236_v37, 1  ;;  %vm4531_vm7 = vcmp.eq.s32.totalorder %v5239_v23, 1  ;;  %v5240_v37 = vmov 0  ;;  %v5243_v51 = vsel %vm4535_vm5, 4294967295, %v5242_v51  ;;  %v1729_v13 = vpop.permute.xlu0 %1728  ;;  %v5302_v47 = vld [vmem:[#allocation31_spill] sm:$0xff] }
 0x22f   :  { %v5241_v37 = vsel %vm4531_vm7, 4294967295, %v5240_v37  ;;  %v1979_v23 = vsel %vm3922_vm14, %v3981_v39, 0.0  ;;  %v4559_v44 = vmul.f32 %v2527_v40, %v4080_v33  ;;  %v2528_v48 = vmul.f32 2.0, %v4483_v56 }
 0x230   :  { %vm5245_vm2 = vcmp.lt.s32.totalorder %v3362_v25, 2  ;;  %v1989_v1 = vadd.f32 %v1979_v23, %v1888_v14  ;;  %vm5247_vm3 = vcmp.lt.s32.totalorder %v3362_v25, 1  ;;  %v5248_v39 = vrot.slane %v4205_v57, %v3094_v9 }
 0x231   :  { %5244 = vst [vmem:[#allocation26_spill] sm:$0xff] %v4559_v44  ;;  %v4566_v11 = vsel %vm5245_vm2, %v3926_v0, %v4198_v49  ;;  %v1739_v46 = vsel %vm5247_vm3, %v1729_v13, %v5246_v17  ;;  %v5251_v40 = vrot.slane %v4210_v60, %v3094_v9  ;;  %v5254_v0 = vrot.slane %v4157_v8, %v3094_v9 }
 0x232   :  { %vm4574_vm14 = vcmp.eq.s32.totalorder %v5248_v39, 1  ;;  %v4592_v17 = vmul.f32 81.0, %v2533_v3  ;;  %vm5258_vm3 = vcmp.lt.s32.totalorder %v3362_v25, 2  ;;  %vm5259_vm10 = vcmp.lt.s32.totalorder %v3362_v25, 1 }
 0x233   :  { %vm4581_vm12 = vcmp.eq.s32.totalorder %v5251_v40, 1  ;;  %vm4588_vm2 = vcmp.eq.s32.totalorder %v5254_v0, 1  ;;  %v1935_v57 = vsel %vm5258_vm3, %v3968_v26, %v4243_v61  ;;  %v1731_v60 = vsel %vm5259_vm10, %v4200_v35, %v1729_v13  ;;  %v5264_v13 = vld [vmem:[#allocation35_spill] sm:$0xff] }
 0x234   :  { %5257 = vst [vmem:[#allocation25_spill] sm:$0xff] %v4592_v17  ;;  %v1775_v23 = vsel %vm4423_vm8, %v1739_v46, 0.0  ;;  %v4605_v8 = vmul.f32 %v4483_v56, %v4483_v56  ;;  %vm5261_vm13 = vcmp.lt.s32.totalorder %v3362_v25, 3  ;;  %v5262_v26 = vsel %vm4255_vm4, %v4313_v21, 0.0  ;;  %v5270_v21 = vld [vmem:[#allocation55_spill] sm:$0xff] }
 0x235   :  { %v4611_v3 = vsel %vm5261_vm13, %v4042_v18, %v4346_v52  ;;  %v2090_v39 = vadd.f32 %v5262_v26, %v1989_v1  ;;  %vm5263_vm10 = vcmp.lt.s32.totalorder %v3362_v25, 126  ;;  %v1785_v46 = vadd.f32 %v5264_v13, %v1775_v23  ;;  %v2234_v1 = vpop.permute.xlu1 %2233  ;;  %v5273_v18 = vld [vmem:[#allocation60_spill] sm:$0xff] }
 0x236   :  { %5260 = vst [vmem:[#allocation29_spill] sm:$0xff] %v4605_v8  ;;  %v2034_v35 = vsel %vm5263_vm10, %v4296_v24, %v2032_v27  ;;  %vm4621_vm3 = vcmp.eq.s32.totalorder %v2265_v16, 1  ;;  %vm4625_vm8 = vcmp.eq.s32.totalorder %v2269_v2, 1  ;;  %vm5269_vm4 = vmmov %vm5263_vm10  ;;  %vm5271_vm13 = vcmp.lt.s32.totalorder %v3362_v25, 4  ;;  %v1931_v16 = vpop.permute.xlu0 %1930 }
 0x237   :  { %v2042_v45 = vsel %vm5269_vm4, %v2032_v27, %v5226_v20  ;;  %v4639_v24 = vsel %vm5271_vm13, %v4556_v41, %v5270_v21  ;;  %v4642_v2 = vmul.f32 %v2528_v48, %v4141_v53  ;;  %v1980_v23 = vsel %vm4466_vm1, %v1935_v57, 0.0  ;;  %v5278_v57 = vld [vmem:[#allocation14_spill] sm:$0xff] }
 0x238   :  { %v1779_v26 = vsel %vm4490_vm15, %v1731_v60, 0.0  ;;  %v1886_v13 = vadd.f32 %v1876_v50, %v1785_v46  ;;  %vm5274_vm10 = vcmp.lt.s32.totalorder %v3362_v25, 2  ;;  %v5275_v27 = vrot.slane %v4273_v59, %v3094_v9 }
 0x239   :  { %5272 = vst [vmem:[#allocation24_spill] sm:$0xff] %v4642_v2  ;;  %v1941_v20 = vsel %vm5274_vm10, %v1931_v16, %v5273_v18  ;;  %v2182_v48 = vsel %vm4290_vm11, %v4611_v3, 0.0  ;;  %v4665_v50 = vsel %vm5271_vm13, %v5278_v57, %v4404_v55  ;;  %v2081_v60 = vsel %vm4507_vm9, %v2034_v35, 0.0  ;;  %v5282_v35 = vld [vmem:[#allocation54_spill] sm:$0xff] }
 0x23a   :  { %vm4654_vm4 = vcmp.eq.s32.totalorder %v5275_v27, 1  ;;  %v1977_v59 = vsel %vm4514_vm0, %v1941_v20, 0.0  ;;  %v2082_v46 = vsel %vm4531_vm7, %v2042_v45, 0.0  ;;  %v2381_v18 = vsel %vm4535_vm5, %v4639_v24, 0.0  ;;  %v5284_v2 = vld [vmem:[#allocation38_spill] sm:$0xff] }
 0x23b   :  { %v1933_v3 = vsel %vm5274_vm10, %v4243_v61, %v1931_v16  ;;  %v5279_v27 = vrot.slane %v4332_v6, %v3094_v9  ;;  %v5283_v20 = vsel %vm3997_vm6, %v5282_v35, 0.0  ;;  %v1789_v8 = vadd.f32 %v5284_v2, %v1779_v26  ;;  %v1830_v6 = vpop.permute.xlu0 %1829  ;;  %v1727_v16 = vpop.permute.xlu1 %1726  ;;  %v5289_v2 = vld [vmem:[#allocation13_spill] sm:$0xff] }
 0x23c   :  { %v2191_v45 = vadd.f32 %v5283_v20, %v2090_v39  ;;  %v1987_v17 = vadd.f32 %v1977_v59, %v1886_v13  ;;  %vm5285_vm11 = vcmp.lt.s32.totalorder %v3362_v25, 125  ;;  %vm5287_vm5 = vcmp.lt.s32.totalorder %v3362_v25, 127  ;;  %v5297_v35 = vld [vmem:[#allocation21_spill] sm:$0xff] }
 0x23d   :  { %vm4682_vm13 = vcmp.eq.s32.totalorder %v5279_v27, 1  ;;  %v2236_v24 = vsel %vm5285_vm11, %v4406_v32, %v2234_v1  ;;  %vm5286_vm10 = vmmov %vm5285_vm11  ;;  %v1832_v54 = vsel %vm5287_vm5, %v4485_v34, %v1830_v6  ;;  %vm5290_vm7 = vcmp.lt.s32.totalorder %v3362_v25, 1  ;;  %v5291_v32 = vld [vmem:[#allocation43_spill] sm:$0xff] }
 0x23e   :  { %v4697_v61 = vsel %vm5286_vm10, %v2234_v1, %v5230_v7  ;;  %vm5288_vm6 = vmmov %vm5287_vm5  ;;  %v1730_v26 = vsel %vm5290_vm7, %v5289_v2, %v1727_v16  ;;  %v5293_v7 = vrot.slane %v4396_v36, %v3094_v9  ;;  %v1981_v34 = vsel %vm4574_vm14, %v1933_v3, 0.0 }
 0x23f   :  { %v1840_v39 = vsel %vm5288_vm6, %v1830_v6, %v5225_v29  ;;  %vm5292_vm11 = vmmov %vm5290_vm7  ;;  %v1879_v29 = vsel %vm4581_vm12, %v1832_v54, 0.0  ;;  %vm5296_vm7 = vnez %v5212_v62  ;;  %v1774_v36 = vsel %vm4490_vm15, %v1730_v26, 0.0 }
 0x240   :  { %v1738_v13 = vsel %vm5292_vm11, %v1727_v16, %v5291_v32  ;;  %vm4714_vm10 = vcmp.eq.s32.totalorder %v5293_v7, 1  ;;  %v1880_v59 = vsel %vm4588_vm2, %v1840_v39, 0.0  ;;  %v1889_v20 = vadd.f32 %v1879_v29, %v5297_v35  ;;  %v5298_v16 = vld [vmem:[#allocation34_spill] sm:$0xff]  ;;  %v2133_v32 = vpop.permute.xlu0 %2132 }
 0x241   :  { %v1770_v27 = vsel %vm5296_vm7, %v1738_v13, 0.0  ;;  %v1890_v6 = vadd.f32 %v1880_v59, %v1789_v8  ;;  %v2283_v3 = vsel %vm4621_vm3, %v2236_v24, 0.0  ;;  %v2284_v54 = vsel %vm4625_vm8, %v4697_v61, 0.0  ;;  %v1929_v13 = vpop.permute.xlu1 %1928  ;;  %v5305_v59 = vld [vmem:[#allocation61_spill] sm:$0xff] }
 0x242   :  { %v1780_v2 = vadd.f32 %v5298_v16, %v1770_v27  ;;  %vm5299_vm5 = vnez %v5198_v15  ;;  %vm5301_vm6 = vnez %v5200_v10  ;;  %v1990_v7 = vadd.f32 %v1980_v23, %v1889_v20  ;;  %v5310_v10 = vld [vmem:[#allocation39_spill] sm:$0xff] }
 0x243   :  { %v5300_v62 = vsel %vm5299_vm5, %v4480_v38, 0.0  ;;  %v5303_v8 = vsel %vm5301_vm6, %v5302_v47, 0.0  ;;  %v1991_v29 = vadd.f32 %v1981_v34, %v1890_v6  ;;  %vm5304_vm15 = vcmp.lt.s32.totalorder %v3362_v25, 3  ;;  %v5314_v6 = vld [vmem:[#allocation45_spill] sm:$0xff] }
 0x244   :  { %v2088_v39 = vadd.f32 %v5300_v62, %v1987_v17  ;;  %v2292_v26 = vadd.f32 %v5303_v8, %v2191_v45  ;;  %v2135_v24 = vsel %vm5304_vm15, %v4346_v52, %v2133_v32  ;;  %vm5306_vm11 = vmmov %vm5304_vm15  ;;  %v5307_v38 = vrot.slane %v4412_v12, %v3094_v9  ;;  %v5322_v8 = vld [vmem:[#allocation66_spill] sm:$0xff] }
 0x245   :  { %v2143_v61 = vsel %vm5306_vm11, %v2133_v32, %v5305_v59  ;;  %v1784_v27 = vadd.f32 %v1774_v36, %v5310_v10  ;;  %vm5311_vm6 = vnez %v5196_v28  ;;  %vm5313_vm15 = vcmp.lt.s32.totalorder %v3362_v25, 2  ;;  %v1828_v62 = vpop.permute.xlu1 %1827 }
 0x246   :  { %vm4752_vm7 = vcmp.eq.s32.totalorder %v5307_v38, 1  ;;  %v2179_v23 = vsel %vm4654_vm4, %v2143_v61, 0.0  ;;  %v5312_v52 = vsel %vm5311_vm6, %v4449_v58, 0.0  ;;  %v1932_v34 = vsel %vm5313_vm15, %v4198_v49, %v1929_v13  ;;  %vm5315_vm11 = vmmov %vm5313_vm15  ;;  %v5316_v49 = vld [vmem:[#allocation22_spill] sm:$0xff] }
 0x247   :  { %v1881_v45 = vadd.f32 %v5312_v52, %v1780_v2  ;;  %v2091_v35 = vadd.f32 %v2081_v60, %v1990_v7  ;;  %v2092_v12 = vadd.f32 %v2082_v46, %v1991_v29  ;;  %v2189_v20 = vadd.f32 %v2179_v23, %v2088_v39  ;;  %v4775_v2 = vpop.permute.xlu0 %2429  ;;  %v5318_v60 = vld [vmem:[#allocation52_spill] sm:$0xff]  ;;  %v5328_v61 = vld [vmem:[#allocation18_spill] sm:$0xff]  ;;  %v5332_v52 = vld [vmem:[#allocation23_spill] sm:$0xff] }
 0x248   :  { %v1940_v16 = vsel %vm5315_vm11, %v1929_v13, %v5314_v6  ;;  %v2183_v36 = vsel %vm4682_vm13, %v2135_v24, 0.0  ;;  %v1976_v58 = vsel %vm4574_vm14, %v1932_v34, 0.0  ;;  %vm5317_vm6 = vnez %v5316_v49  ;;  %v5324_v29 = vld [vmem:[#allocation64_spill] sm:$0xff]  ;;  %v5326_v24 = vld [vmem:[#allocation42_spill] sm:$0xff]  ;;  %v5337_v49 = vld [vmem:[#allocation63_spill] sm:$0xff] }
 0x249   :  { %v1972_v28 = vsel %vm4514_vm0, %v1940_v16, 0.0  ;;  %v5319_v46 = vsel %vm5317_vm6, %v5318_v60, 0.0  ;;  %v2193_v32 = vadd.f32 %v2183_v36, %v2092_v12  ;;  %vm5320_vm15 = vnez %v5204_v22 }
 0x24a   :  { %v4781_v39 = vadd.f32 %v5319_v46, %v2292_v26  ;;  %v5321_v13 = vsel %vm5320_vm15, %v4499_v43, 0.0  ;;  %v1982_v42 = vadd.f32 %v1972_v28, %v1881_v45  ;;  %vm5323_vm0 = vcmp.lt.s32.totalorder %v3362_v25, 124  ;;  %v5339_v46 = vld [vmem:[#allocation17_spill] sm:$0xff] }
 0x24b   :  { %v2290_v47 = vadd.f32 %v5321_v13, %v2189_v20  ;;  %v2439_v31 = vsel %vm5323_vm0, %v5322_v8, %v4775_v2  ;;  %vm5325_vm14 = vcmp.lt.s32.totalorder %v3362_v25, 127  ;;  %v5329_v43 = vrot.slane %v5328_v61, %v3094_v9  ;;  %v5333_v20 = vld [vmem:[#allocation20_spill] sm:$0xff]  ;;  %v2030_v36 = vpop.permute.xlu0 %2029 }
 0x24c   :  { %v2479_v7 = vsel %vm4714_vm10, %v2439_v31, 0.0  ;;  %v1831_v26 = vsel %vm5325_vm14, %v5324_v29, %v1828_v62  ;;  %vm5327_vm11 = vmmov %vm5325_vm14  ;;  %v2192_v10 = vadd.f32 %v2182_v48, %v2091_v35  ;;  %v5334_v28 = vsel %vm5299_vm5, %v4455_v19, 0.0  ;;  %v2131_v48 = vpop.permute.xlu1 %2130  ;;  %v5335_v35 = vld [vmem:[#allocation56_spill] sm:$0xff] }
 0x24d   :  { %v1839_v59 = vsel %vm5327_vm11, %v1828_v62, %v5326_v24  ;;  %vm4802_vm6 = vcmp.eq.s32.totalorder %v5329_v43, 1  ;;  %v2391_v23 = vadd.f32 %v2381_v18, %v2290_v47  ;;  %v4807_v45 = vadd.f32 %v2479_v7, %v5332_v52  ;;  %v5341_v13 = vld [vmem:[#allocation44_spill] sm:$0xff]  ;;  %v5343_v47 = vld [vmem:[#allocation62_spill] sm:$0xff] }
 0x24e   :  { %v1874_v34 = vsel %vm4581_vm12, %v1831_v26, 0.0  ;;  %v1875_v12 = vsel %vm4588_vm2, %v1839_v59, 0.0  ;;  %v2083_v62 = vadd.f32 %v5334_v28, %v1982_v42  ;;  %v2293_v18 = vadd.f32 %v2283_v3, %v2192_v10  ;;  %v5347_v26 = vld [vmem:[#allocation47_spill] sm:$0xff]  ;;  %v5349_v10 = vld [vmem:[#allocation48_spill] sm:$0xff] }
 0x24f   :  { %v1884_v6 = vadd.f32 %v1874_v34, %v5333_v20  ;;  %v1885_v16 = vadd.f32 %v1875_v12, %v1784_v27  ;;  %vm5336_vm0 = vnez %v5335_v35  ;;  %vm5340_vm12 = vcmp.lt.s32.totalorder %v3362_v25, 126  ;;  %v2333_v30 = vpop.permute.xlu0 %2332  ;;  %v5358_v20 = vld [vmem:[#allocation15_spill] sm:$0xff] }
 0x250   :  { %v5338_v60 = vsel %vm5336_vm0, %v5337_v49, 0.0  ;;  %v2033_v14 = vsel %vm5340_vm12, %v5339_v46, %v2030_v36  ;;  %vm5342_vm2 = vmmov %vm5340_vm12  ;;  %vm5344_vm14 = vcmp.lt.s32.totalorder %v3362_v25, 3  ;;  %v5345_v19 = vsel %vm4466_vm1, %v4566_v11, 0.0  ;;  %v2331_v61 = vpop.permute.xlu1 %2330 }
 0x251   :  { %v2492_v44 = vadd.f32 %v5338_v60, %v2391_v23  ;;  %v2041_v27 = vsel %vm5342_vm2, %v2030_v36, %v5341_v13  ;;  %v2134_v15 = vsel %vm5344_vm14, %v5343_v47, %v2131_v48  ;;  %v1985_v3 = vadd.f32 %v5345_v19, %v1884_v6  ;;  %vm5348_vm11 = vmmov %vm5344_vm14 }
 0x252   :  { %v1986_v42 = vadd.f32 %v1976_v58, %v1885_v16  ;;  %v2076_v8 = vsel %vm4507_vm9, %v2033_v14, 0.0  ;;  %vm5346_vm5 = vnez %v5241_v37  ;;  %v2379_v7 = vsel %vm4752_vm7, %v4665_v50, 0.0 }
 0x253   :  { %v2077_v31 = vsel %vm5346_vm5, %v2041_v27, 0.0  ;;  %v2498_v29 = vmul.f32 0.012345679, %v2492_v44  ;;  %v2142_v24 = vsel %vm5348_vm11, %v2131_v48, %v5347_v26  ;;  %v2294_v5 = vadd.f32 %v2284_v54, %v2193_v32  ;;  %v5352_v32 = vld [vmem:[#allocation37_spill] sm:$0xff]  ;;  %v5366_v48 = vld [vmem:[#allocation28_spill] sm:$0xff]  ;;  %v2232_v14 = vpop.permute.xlu0 %2231 }
 0x254   :  { %v2086_v59 = vadd.f32 %v2076_v8, %v1985_v3  ;;  %v2087_v11 = vadd.f32 %v2077_v31, %v1986_v42  ;;  %v2174_v58 = vsel %vm4654_vm4, %v2142_v24, 0.0  ;;  %v4848_v37 = vmul.f32 %v4483_v56, %v2492_v44  ;;  %v2432_v22 = vpop.permute.xlu1 %2431  ;;  %v5372_v3 = vld [vmem:[#allocation12_spill] sm:$0xff]  ;;  %v5374_v26 = vld [vmem:[#allocation57_spill] sm:$0xff] }
 0x255   :  { %v2178_v43 = vsel %vm4682_vm13, %v2134_v15, 0.0  ;;  %v2184_v50 = vadd.f32 %v2174_v58, %v2083_v62  ;;  %vm5350_vm9 = vcmp.lt.s32.totalorder %v3362_v25, 4  ;;  %v5353_v21 = vrot.slane %v5352_v32, %v3094_v9  ;;  %v5370_v15 = vld [vmem:[#allocation46_spill] sm:$0xff]  ;;  %v5379_v32 = vld [vmem:[#allocation19_spill] sm:$0xff] }
 0x256   :  { %v2344_v23 = vsel %vm5350_vm9, %v2333_v30, %v5349_v10  ;;  %vm5351_vm1 = vmmov %vm5350_vm9  ;;  %v2188_v34 = vadd.f32 %v2178_v43, %v2087_v11  ;;  %vm5357_vm12 = vnez %v5243_v51  ;;  %v5364_v28 = vsel %vm5320_vm15, %v4461_v63, 0.0  ;;  %v5368_v63 = vld [vmem:[#allocation16_spill] sm:$0xff] }
 0x257   :  { %v2337_v54 = vsel %vm5351_vm1, %v2331_v61, %v4556_v41  ;;  %vm4861_vm4 = vcmp.eq.s32.totalorder %v5353_v21, 1  ;;  %vm5356_vm13 = vmmov %vm5351_vm1  ;;  %v2376_v12 = vsel %vm5357_vm12, %v2344_v23, 0.0  ;;  %v5360_v41 = vld [vmem:[#allocation36_spill] sm:$0xff]  ;;  %v2285_v62 = vadd.f32 %v5364_v28, %v2184_v50 }
 0x258   :  { %v2336_v57 = vsel %vm5356_vm13, %v4404_v55, %v2333_v30  ;;  %vm5359_vm2 = vmmov %vm5351_vm1  ;;  %v5361_v16 = vrot.slane %v5360_v41, %v3094_v9  ;;  %v2385_v51 = vsel %vm4802_vm6, %v2337_v54, 0.0  ;;  %vm5365_vm5 = vnez %v5182_v4  ;;  %v2436_v10 = vpop.permute.xlu1 %2435  ;;  %v5377_v54 = vld [vmem:[#allocation49_spill] sm:$0xff] }
 0x259   :  { %v2339_v6 = vsel %vm5359_vm2, %v5358_v20, %v2331_v61  ;;  %v5367_v49 = vsel %vm5365_vm5, %v5366_v48, 0.0  ;;  %v2395_v46 = vadd.f32 %v2385_v51, %v2294_v5  ;;  %v2516_v13 = vmul.f32 2.0, %v2498_v29  ;;  %v2434_v61 = vpop.permute.xlu0 %2433 }
 0x25a   :  { %vm4876_vm14 = vcmp.eq.s32.totalorder %v5361_v16, 1  ;;  %v2384_v55 = vsel %vm4752_vm7, %v2339_v6, 0.0  ;;  %v2187_v9 = vadd.f32 %v5367_v49, %v2086_v59  ;;  %v2522_v27 = vmul.f32 %v2498_v29, %v2498_v29  ;;  %v5381_v6 = vld [vmem:[#allocation26_spill] sm:$0xff] }
 0x25b   :  { %v2394_v60 = vadd.f32 %v2384_v55, %v2293_v18  ;;  %v2386_v47 = vadd.f32 %v2376_v12, %v2285_v62  ;;  %vm5369_vm15 = vcmp.lt.s32.totalorder %v3362_v25, 125  ;;  %vm5373_vm11 = vcmp.lt.s32.totalorder %v3362_v25, 124  ;;  %v5382_v16 = vld [vmem:[#allocation58_spill] sm:$0xff] }
 0x25c   :  { %v2235_v17 = vsel %vm5369_vm15, %v5368_v63, %v2232_v14  ;;  %vm5371_vm7 = vmmov %vm5369_vm15  ;;  %v2440_v4 = vsel %vm5373_vm11, %v5372_v3, %v2432_v22  ;;  %v2380_v18 = vsel %vm4802_vm6, %v2336_v57, 0.0  ;;  %v2518_v31 = vmul.f32 %v2516_v13, %v2492_v44  ;;  %v5386_v63 = vld [vmem:[#allocation24_spill] sm:$0xff] }
 0x25d   :  { %v2243_v19 = vsel %vm5371_vm7, %v2232_v14, %v5370_v15  ;;  %v2278_v42 = vsel %vm4621_vm3, %v2235_v17, 0.0  ;;  %v5375_v24 = vsel %vm5336_vm0, %v5374_v26, 0.0  ;;  %v2484_v58 = vsel %vm4714_vm10, %v2440_v4, 0.0 }
 0x25e   :  { %v2279_v8 = vsel %vm4625_vm8, %v2243_v19, 0.0  ;;  %v2487_v5 = vadd.f32 %v5375_v24, %v2386_v47  ;;  %v2288_v59 = vadd.f32 %v2278_v42, %v2187_v9  ;;  %v2524_v30 = vmul.f32 81.0, %v2522_v27  ;;  %vm5376_vm8 = vmmov %vm5373_vm11  ;;  %v5384_v9 = vld [vmem:[#allocation25_spill] sm:$0xff] }
 0x25f   :  { %v2289_v11 = vadd.f32 %v2279_v8, %v2188_v34  ;;  %v2494_v38 = vadd.f32 %v2484_v58, %v4781_v39  ;;  %v2506_v40 = vmul.f32 %v2498_v29, %v4141_v53  ;;  %v2510_v0 = vmul.f32 %v4483_v56, %v2498_v29  ;;  %vm5378_vm3 = vmmov %vm5376_vm8  ;;  %v5385_v47 = vld [vmem:[#allocation29_spill] sm:$0xff] }
 0x260   :  { %v2497_v43 = vmul.f32 0.012345679, %v2487_v5  ;;  %v2389_v44 = vadd.f32 %v2379_v7, %v2288_v59  ;;  %v2437_v35 = vsel %vm5376_vm8, %v4775_v2, %v2434_v61  ;;  %v2445_v1 = vsel %vm5378_vm3, %v2434_v61, %v5377_v54  ;;  %vm5380_vm10 = vmmov %vm5378_vm3 }
 0x261   :  { %v2390_v50 = vadd.f32 %v2380_v18, %v2289_v11  ;;  %v2520_v23 = vsub.f32 %v2494_v38, %v2518_v31  ;;  %v2480_v39 = vsel %vm4861_vm4, %v2437_v35, 0.0  ;;  %v2501_v53 = vmul.f32 %v5379_v32, %v2487_v5  ;;  %vm5383_vm6 = vmmov %vm5378_vm3 }
 0x262   :  { %v2515_v21 = vmul.f32 2.0, %v2497_v43  ;;  %v2481_v56 = vsel %vm4876_vm14, %v2445_v1, 0.0  ;;  %v2490_v7 = vadd.f32 %v2480_v39, %v2389_v44  ;;  %v2505_v29 = vmul.f32 %v2497_v43, %v4080_v33 }
 0x263   :  { %v2526_v34 = vadd.f32 %v2524_v30, %v2520_v23  ;;  %v2491_v2 = vadd.f32 %v2481_v56, %v2390_v50  ;;  %v2521_v57 = vmul.f32 %v2497_v43, %v2497_v43  ;;  %v2438_v12 = vsel %vm5380_vm10, %v2432_v22, %v2436_v10 }
 0x264   :  { %v2517_v20 = vmul.f32 %v2515_v21, %v2487_v5  ;;  %v2531_v41 = vsub.f32 %v2490_v7, %v5381_v6  ;;  %v2446_v28 = vsel %vm5383_vm6, %v2436_v10, %v5382_v16  ;;  %v2485_v62 = vsel %vm4861_vm4, %v2438_v12, 0.0 }
 0x265   :  { %v2503_v55 = vsub.f32 %v2491_v2, %v2501_v53  ;;  %v2523_v51 = vmul.f32 81.0, %v2521_v57  ;;  %v2486_v33 = vsel %vm4876_vm14, %v2446_v28, 0.0  ;;  %v2495_v48 = vadd.f32 %v2485_v62, %v2394_v60 }
 0x266   :  { %v2519_v49 = vsub.f32 %v4807_v45, %v2517_v20  ;;  %v2537_v14 = vadd.f32 %v5384_v9, %v2531_v41  ;;  %v2496_v13 = vadd.f32 %v2486_v33, %v2395_v46  ;;  %v2509_v27 = vmul.f32 %v5379_v32, %v2497_v43 }
 0x267   :  { %v2507_v22 = vsub.f32 %v2503_v55, %v2505_v29  ;;  %v2536_v25 = vmul.f32 81.0, %v5385_v47  ;;  %v2532_v17 = vsub.f32 %v2495_v48, %v5386_v63  ;;  %v2512_v60 = vmul.f32 81.0, %v2510_v0 }
 0x268   :  { %v2525_v52 = vadd.f32 %v2523_v51, %v2519_v49  ;;  %v2504_v15 = vsub.f32 %v2496_v13, %v4848_v37  ;;  %v2511_v19 = vmul.f32 81.0, %v2509_v27 }
 0x269   :  { %v2538_v3 = vadd.f32 %v2536_v25, %v2532_v17 }
 0x26a   :  { %v2541_v36 = vmul.f32 %v2537_v14, %v2525_v52  ;;  %v2508_v4 = vsub.f32 %v2504_v15, %v2506_v40  ;;  %v2513_v18 = vadd.f32 %v2511_v19, %v2507_v22 }
 0x26b   :  { %v2542_v45 = vmul.f32 %v2538_v3, %v2526_v34 }
 0x26c   :  { %v2543_v42 = vadd.f32 1e-05, %v2541_v36  ;;  %v2514_v8 = vadd.f32 %v2512_v60, %v2508_v4  ;;  %v2539_v31 = vmul.f32 %v2513_v18, %v2513_v18 }
 0x26d   :  { %v2544_v46 = vadd.f32 1e-05, %v2542_v45 }
 0x26e   :  { %2786 = vrcp.f32 %v2543_v42  ;;  %v2540_v24 = vmul.f32 %v2514_v8, %v2514_v8 }
 0x26f   :  { %2788 = vrcp.f32 %v2544_v46 }
 0x278   :  { %v2787_v26 = vpop.eup %2786 }
 0x279   :  { %v2789_v5 = vpop.eup %2788  ;;  %v2547_v59 = vmul.f32 %v2787_v26, %v2539_v31 }
 0x27a   :  { %v2548_v11 = vmul.f32 %v2789_v5, %v2540_v24 }
 0x27c   :  { %v2549_v58 = vadd.f32 %v2548_v11, %v2547_v59 }
 0x27e   :  { %2550 = vadd.xlane.f32.xlu0 %v2549_v58 }
 0x30b   :  { %v2551_v37 = vpop.xlane.xlu0 %2550 }
 0x30c   :  { %v2552_v30 = vrot.slane %v2551_v37, 4 }
 0x30e   :  { %v2553_v38 = vadd.f32 %v2552_v30, %v2551_v37 }
 0x310   :  { %v2554_v61 = vrot.slane %v2553_v38, 2 }
 0x312   :  { %v2555_v40 = vadd.f32 %v2554_v61, %v2553_v38 }
 0x314   :  { %v2556_v0 = vrot.slane %v2555_v40, 1 }
 0x316   :  { %v2557_v43 = vadd.f32 %v2556_v0, %v2555_v40 }
 0x318   :  { %2768 = vpush %v2557_v43 }
 0x349   :  { %s2769_s9 = spop %2768 }
 0x34a   :  { %v2559_v44 = vstv %s2769_s9 }
 0x34b   :  { %2561 = vst [vmem:[#allocation8] sm:$0x1] %v2559_v44 }
 0x34c   :  { %2867 = shalt.err (!%p2864_p0)
}
 0x34d   :  { %s2868_s13 = scalar_lea.hbm %s4960_s4, 16 }
 0x34e   :  { %p2869_p1 = scmp.ne.s32.totalorder %s4960_s4, %s2868_s13  ;;  %p2872_p2 = scmp.lt.u32.totalorder %s2868_s13, %s4960_s4 }
 0x350   :  { %p2874_p3 = pnand %p2872_p2, %p2869_p1 }
 0x352   :  { %2877 = shalt.err (!%p2874_p3)
}
 0x353   :  { %2571 = dma.vmem_to_hbm [thread:$0]  %s2569_s8, 16, %s4960_s4, [#allocation4]  }
 0x354   :  { %2882 = dma.done.wait [#allocation4], 16  }
 0x355   :  { %2883 = vsyncadd [#allocation4], 4294967280 }
 0x356   :  { %2575 = vsyncpa [#allocation3], 1 }
 0x357   :  { %2576 = vsyncpa [#allocation6], 1 }
 0x358   :  { %2577 = vsyncpa [#allocation4], 1 }

</bundles_post_ra>
